<compile_context>
chip_gen: v7x
topology: tpu7x:2x2x1
jax: 0.10.0
libtpu: 0.0.40
codegen_flags: <defaults>
</compile_context>

<pallas_src>
import jax
import jax.numpy as jnp
from jax.experimental import pallas as pl
from jax.experimental.pallas import tpu as pltpu

# channel sizes of the module: conv1..conv6
CHANNELS = [20, 8, 16, 32, 64, 128, 512]
N_LAYERS = len(CHANNELS) - 1
LANE = 128
CIN_PADS = [LANE] * N_LAYERS                         # every real C_in <= 128
COUT_PADS = [LANE] * (N_LAYERS - 1) + [CHANNELS[-1]]  # 128,...,128,512
B_SLAB_ROWS = 8                                       # sublane-aligned (>= N_LAYERS)


def gcn_kernel(a_ref, x_ref, w_ref, b_ref, z_ref, conv_ref):
    """One graph per grid step.

    a_ref   : [N, N]     normalized adjacency A_hat
    x_ref   : [N, 128]   node features, zero-padded to 128 lanes
    w_ref   : [6*128, 512] packed, lane-padded weights (layer i -> rows i*128:(i+1)*128)
    b_ref   : [8, 512]   packed, lane-padded biases (layer i -> row i)
    z_ref   : [1, 512]   L2-normalized max-pooled embedding
    conv_ref: [N, 512]   per-node embeddings (tanh(relu(conv6)))
    """
    a = a_ref[...]                       # [N, N]
    h = x_ref[...]                       # [N, 128] lane-dense

    for i in range(N_LAYERS):
        cin_pad, cout_pad = CIN_PADS[i], COUT_PADS[i]
        # static, tile-aligned slices of the resident parameter slabs (no extra DMA)
        w = w_ref[i * LANE:(i + 1) * LANE, :cout_pad]      # [128, cout_pad]
        b = b_ref[i:i + 1, :cout_pad]                      # [1, cout_pad]

        if cout_pad > cin_pad:
            # aggregate on the narrower channel width first: (A @ h) @ W
            h = jnp.dot(a, h, preferred_element_type=jnp.float32)
            h = jnp.dot(h, w, preferred_element_type=jnp.float32)
        else:
            # h @ W first, then aggregate
            h = jnp.dot(h, w, preferred_element_type=jnp.float32)
            h = jnp.dot(a, h, preferred_element_type=jnp.float32)
        # GCNConv bias + ReLU (ReLU follows every conv in the module, incl. conv6)
        h = jnp.maximum(h + b, 0.0)

    # F.tanh after the last ReLU
    h = jnp.tanh(h)                                        # [N, 512]
    conv_ref[...] = h

    # z = max over nodes, then L2-normalize (eps guard against all-zero embeddings)
    z = jnp.max(h, axis=0, keepdims=True)                  # [1, 512]
    norm_sq = jnp.maximum(jnp.sum(z * z), 1e-12)
    z_ref[...] = z * jax.lax.rsqrt(norm_sq)


def build_normalized_adjacency(edge_index, num_nodes):
    """GCNConv's add_self_loops + symmetric D^-1/2 (A+I) D^-1/2 normalization (JAX glue)."""
    src, dst = edge_index[0], edge_index[1]
    a = jnp.zeros((num_nodes, num_nodes), jnp.float32).at[dst, src].add(1.0)
    a = a + jnp.eye(num_nodes, dtype=jnp.float32)
    deg = a.sum(axis=1)
    dinv = jax.lax.rsqrt(deg)
    return dinv[:, None] * a * dinv[None, :]


def init_params(key, channels=CHANNELS):
    """Deterministic glorot-uniform weights, zero biases (matches GCNConv shapes)."""
    weights, biases = [], []
    for i in range(len(channels) - 1):
        key, sub = jax.random.split(key)
        cin, cout = channels[i], channels[i + 1]
        limit = jnp.sqrt(6.0 / (cin + cout))
        w = jax.random.uniform(sub, (cin, cout), jnp.float32, -limit, limit)
        b = jnp.zeros((cout,), jnp.float32)
        weights.append(w)
        biases.append(b)
    return weights, biases


def pack_params(weights, biases):
    """Pack all layers into one lane-padded weight slab + one bias slab."""
    latent = CHANNELS[-1]
    w_slab = jnp.zeros((N_LAYERS * LANE, latent), jnp.float32)
    b_slab = jnp.zeros((B_SLAB_ROWS, latent), jnp.float32)
    for i, (w, b) in enumerate(zip(weights, biases)):
        cin, cout = w.shape
        w_slab = w_slab.at[i * LANE:i * LANE + cin, :cout].set(w)
        b_slab = b_slab.at[i, :cout].set(b.reshape(-1))
    return w_slab, b_slab


def gcn_forward(x, a_hat, packed_params):
    """Batched forward.

    x       : [B, N, 20]  node features for B graphs
    a_hat   : [B, N, N]   normalized adjacency per graph
    returns : (z [B, 1, 512], conv_out [B, N, 512])  -- per-graph forward(..., get_conv=True)
    """
    w_slab, b_slab = packed_params
    B, N, cin = x.shape
    latent = CHANNELS[-1]

    # zero-pad input channels to a lane-dense 128 width
    x_pad = jnp.pad(x, ((0, 0), (0, 0), (0, LANE - cin)))

    in_specs = [
        pl.BlockSpec((None, N, N), lambda b: (b, 0, 0)),        # A_hat, one graph per step
        pl.BlockSpec((None, N, LANE), lambda b: (b, 0, 0)),     # padded features
        pl.BlockSpec(w_slab.shape, lambda b: (0, 0)),           # resident weight slab
        pl.BlockSpec(b_slab.shape, lambda b: (0, 0)),           # resident bias slab
    ]
    out_specs = (
        pl.BlockSpec((None, 1, latent), lambda b: (b, 0, 0)),   # z, lane-dense 512
        pl.BlockSpec((None, N, latent), lambda b: (b, 0, 0)),   # conv_out
    )
    out_shape = (
        jax.ShapeDtypeStruct((B, 1, latent), jnp.float32),
        jax.ShapeDtypeStruct((B, N, latent), jnp.float32),
    )

    return pl.pallas_call(
        gcn_kernel,
        grid=(B,),
        in_specs=in_specs,
        out_specs=out_specs,
        out_shape=out_shape,
        compiler_params=pltpu.CompilerParams(
            dimension_semantics=("parallel",),
        ),
    )(a_hat, x_pad, w_slab, b_slab)


if __name__ == "__main__":
    key = jax.random.PRNGKey(0)
    kx, kp = jax.random.split(key)

    B, N = 2, 16
    in_channels = CHANNELS[0]
    latent_dim = CHANNELS[-1]

    # node features for B graphs (analogue of data.x = [N, 20])
    x = jax.random.normal(kx, (B, N, in_channels), jnp.float32)

    # deterministic graphs: bidirectional ring; ring + chords
    idx = jnp.arange(N)
    ring_src = jnp.concatenate([idx, (idx + 1) % N])
    ring_dst = jnp.concatenate([(idx + 1) % N, idx])
    e0 = jnp.stack([ring_src, ring_dst]).astype(jnp.int32)
    chord_src = jnp.concatenate([idx, (idx + 4) % N])
    chord_dst = jnp.concatenate([(idx + 4) % N, idx])
    e1 = jnp.concatenate(
        [e0, jnp.stack([chord_src, chord_dst]).astype(jnp.int32)], axis=1
    )

    a_hat = jnp.stack([build_normalized_adjacency(e, N) for e in (e0, e1)])

    weights, biases = init_params(kp)
    packed = pack_params(weights, biases)

    z, conv_out = jax.jit(gcn_forward)(x, a_hat, packed)
    jax.block_until_ready((z, conv_out))

    assert z.shape == (B, 1, latent_dim), z.shape
    assert conv_out.shape == (B, N, latent_dim), conv_out.shape
    assert bool(jnp.isfinite(z).all()) and bool(jnp.isfinite(conv_out).all())
    norms = jnp.linalg.norm(z.reshape(B, latent_dim), axis=-1)
    assert bool(jnp.allclose(norms, 1.0, atol=1e-5)), norms
    print("KERNEL_OK")
</pallas_src>

<mosaic_0001>
module attributes {stable_mosaic.version = 11 : i64} {
  func.func @gcn_kernel(%arg0: i32, %arg1: memref<1x16x16xf32, #tpu.memory_space<vmem>>, %arg2: memref<1x16x128xf32, #tpu.memory_space<vmem>>, %arg3: memref<768x512xf32, #tpu.memory_space<vmem>>, %arg4: memref<8x512xf32, #tpu.memory_space<vmem>>, %arg5: memref<1x1x512xf32, #tpu.memory_space<vmem>>, %arg6: memref<1x16x512xf32, #tpu.memory_space<vmem>>) attributes {dimension_semantics = [#tpu.dimension_semantics<parallel>], iteration_bounds = array<i64: 2>, scalar_prefetch = 0 : i64, scratch_operands = 0 : i64, tpu.core_type = #tpu.core_type<tc>, window_params = [{transform_indices = @transform_0, window_bounds = array<i64: 1, 16, 16>}, {transform_indices = @transform_1, window_bounds = array<i64: 1, 16, 128>}, {pipeline_mode = #tpu.pipeline_mode<synchronous>, transform_indices = @transform_2, window_bounds = array<i64: 768, 512>}, {pipeline_mode = #tpu.pipeline_mode<synchronous>, transform_indices = @transform_3, window_bounds = array<i64: 8, 512>}, {transform_indices = @transform_4, window_bounds = array<i64: 1, 1, 512>}, {transform_indices = @transform_5, window_bounds = array<i64: 1, 16, 512>}]} {
    %c0 = arith.constant 0 : index
    %c0_0 = arith.constant 0 : index
    %c0_1 = arith.constant 0 : index
    %0 = vector.load %arg1[%c0, %c0_0, %c0_1] : memref<1x16x16xf32, #tpu.memory_space<vmem>>, vector<1x16x16xf32>
    %1 = vector.shape_cast %0 : vector<1x16x16xf32> to vector<16x16xf32>
    %c0_2 = arith.constant 0 : index
    %c0_3 = arith.constant 0 : index
    %c0_4 = arith.constant 0 : index
    %2 = vector.load %arg2[%c0_2, %c0_3, %c0_4] : memref<1x16x128xf32, #tpu.memory_space<vmem>>, vector<1x16x128xf32>
    %3 = vector.shape_cast %2 : vector<1x16x128xf32> to vector<16x128xf32>
    %c0_5 = arith.constant 0 : index
    %c0_6 = arith.constant 0 : index
    %4 = vector.load %arg3[%c0_5, %c0_6] : memref<768x512xf32, #tpu.memory_space<vmem>>, vector<128x128xf32>
    %c0_7 = arith.constant 0 : index
    %c0_8 = arith.constant 0 : index
    %5 = vector.load %arg4[%c0_7, %c0_8] : memref<8x512xf32, #tpu.memory_space<vmem>>, vector<1x128xf32>
    %cst = arith.constant dense<0.000000e+00> : vector<16x128xf32>
    %6 = tpu.matmul %3, %4, %cst {dimension_numbers = #tpu.dot_dimension_numbers<[1], [0], [0], [1], [0, 0, 1, 1], [], []>} : vector<16x128xf32>, vector<128x128xf32>, vector<16x128xf32> -> vector<16x128xf32>
    %cst_9 = arith.constant dense<0.000000e+00> : vector<16x128xf32>
    %7 = tpu.matmul %1, %6, %cst_9 {dimension_numbers = #tpu.dot_dimension_numbers<[1], [0], [0], [1], [0, 0, 1, 1], [], []>} : vector<16x16xf32>, vector<16x128xf32>, vector<16x128xf32> -> vector<16x128xf32>
    %8 = vector.broadcast %5 : vector<1x128xf32> to vector<16x128xf32>
    %9 = arith.addf %7, %8 : vector<16x128xf32>
    %cst_10 = arith.constant 0.000000e+00 : f32
    %10 = vector.broadcast %cst_10 : f32 to vector<16x128xf32>
    %11 = arith.maximumf %9, %10 : vector<16x128xf32>
    %c128 = arith.constant 128 : index
    %c0_11 = arith.constant 0 : index
    %12 = vector.load %arg3[%c128, %c0_11] : memref<768x512xf32, #tpu.memory_space<vmem>>, vector<128x128xf32>
    %c1 = arith.constant 1 : index
    %c0_12 = arith.constant 0 : index
    %13 = vector.load %arg4[%c1, %c0_12] : memref<8x512xf32, #tpu.memory_space<vmem>>, vector<1x128xf32>
    %cst_13 = arith.constant dense<0.000000e+00> : vector<16x128xf32>
    %14 = tpu.matmul %11, %12, %cst_13 {dimension_numbers = #tpu.dot_dimension_numbers<[1], [0], [0], [1], [0, 0, 1, 1], [], []>} : vector<16x128xf32>, vector<128x128xf32>, vector<16x128xf32> -> vector<16x128xf32>
    %cst_14 = arith.constant dense<0.000000e+00> : vector<16x128xf32>
    %15 = tpu.matmul %1, %14, %cst_14 {dimension_numbers = #tpu.dot_dimension_numbers<[1], [0], [0], [1], [0, 0, 1, 1], [], []>} : vector<16x16xf32>, vector<16x128xf32>, vector<16x128xf32> -> vector<16x128xf32>
    %16 = vector.broadcast %13 : vector<1x128xf32> to vector<16x128xf32>
    %17 = arith.addf %15, %16 : vector<16x128xf32>
    %cst_15 = arith.constant 0.000000e+00 : f32
    %18 = vector.broadcast %cst_15 : f32 to vector<16x128xf32>
    %19 = arith.maximumf %17, %18 : vector<16x128xf32>
    %c256 = arith.constant 256 : index
    %c0_16 = arith.constant 0 : index
    %20 = vector.load %arg3[%c256, %c0_16] : memref<768x512xf32, #tpu.memory_space<vmem>>, vector<128x128xf32>
    %c2 = arith.constant 2 : index
    %c0_17 = arith.constant 0 : index
    %21 = vector.load %arg4[%c2, %c0_17] : memref<8x512xf32, #tpu.memory_space<vmem>>, vector<1x128xf32>
    %cst_18 = arith.constant dense<0.000000e+00> : vector<16x128xf32>
    %22 = tpu.matmul %19, %20, %cst_18 {dimension_numbers = #tpu.dot_dimension_numbers<[1], [0], [0], [1], [0, 0, 1, 1], [], []>} : vector<16x128xf32>, vector<128x128xf32>, vector<16x128xf32> -> vector<16x128xf32>
    %cst_19 = arith.constant dense<0.000000e+00> : vector<16x128xf32>
    %23 = tpu.matmul %1, %22, %cst_19 {dimension_numbers = #tpu.dot_dimension_numbers<[1], [0], [0], [1], [0, 0, 1, 1], [], []>} : vector<16x16xf32>, vector<16x128xf32>, vector<16x128xf32> -> vector<16x128xf32>
    %24 = vector.broadcast %21 : vector<1x128xf32> to vector<16x128xf32>
    %25 = arith.addf %23, %24 : vector<16x128xf32>
    %cst_20 = arith.constant 0.000000e+00 : f32
    %26 = vector.broadcast %cst_20 : f32 to vector<16x128xf32>
    %27 = arith.maximumf %25, %26 : vector<16x128xf32>
    %c384 = arith.constant 384 : index
    %c0_21 = arith.constant 0 : index
    %28 = vector.load %arg3[%c384, %c0_21] : memref<768x512xf32, #tpu.memory_space<vmem>>, vector<128x128xf32>
    %c3 = arith.constant 3 : index
    %c0_22 = arith.constant 0 : index
    %29 = vector.load %arg4[%c3, %c0_22] : memref<8x512xf32, #tpu.memory_space<vmem>>, vector<1x128xf32>
    %cst_23 = arith.constant dense<0.000000e+00> : vector<16x128xf32>
    %30 = tpu.matmul %27, %28, %cst_23 {dimension_numbers = #tpu.dot_dimension_numbers<[1], [0], [0], [1], [0, 0, 1, 1], [], []>} : vector<16x128xf32>, vector<128x128xf32>, vector<16x128xf32> -> vector<16x128xf32>
    %cst_24 = arith.constant dense<0.000000e+00> : vector<16x128xf32>
    %31 = tpu.matmul %1, %30, %cst_24 {dimension_numbers = #tpu.dot_dimension_numbers<[1], [0], [0], [1], [0, 0, 1, 1], [], []>} : vector<16x16xf32>, vector<16x128xf32>, vector<16x128xf32> -> vector<16x128xf32>
    %32 = vector.broadcast %29 : vector<1x128xf32> to vector<16x128xf32>
    %33 = arith.addf %31, %32 : vector<16x128xf32>
    %cst_25 = arith.constant 0.000000e+00 : f32
    %34 = vector.broadcast %cst_25 : f32 to vector<16x128xf32>
    %35 = arith.maximumf %33, %34 : vector<16x128xf32>
    %c512 = arith.constant 512 : index
    %c0_26 = arith.constant 0 : index
    %36 = vector.load %arg3[%c512, %c0_26] : memref<768x512xf32, #tpu.memory_space<vmem>>, vector<128x128xf32>
    %c4 = arith.constant 4 : index
    %c0_27 = arith.constant 0 : index
    %37 = vector.load %arg4[%c4, %c0_27] : memref<8x512xf32, #tpu.memory_space<vmem>>, vector<1x128xf32>
    %cst_28 = arith.constant dense<0.000000e+00> : vector<16x128xf32>
    %38 = tpu.matmul %35, %36, %cst_28 {dimension_numbers = #tpu.dot_dimension_numbers<[1], [0], [0], [1], [0, 0, 1, 1], [], []>} : vector<16x128xf32>, vector<128x128xf32>, vector<16x128xf32> -> vector<16x128xf32>
    %cst_29 = arith.constant dense<0.000000e+00> : vector<16x128xf32>
    %39 = tpu.matmul %1, %38, %cst_29 {dimension_numbers = #tpu.dot_dimension_numbers<[1], [0], [0], [1], [0, 0, 1, 1], [], []>} : vector<16x16xf32>, vector<16x128xf32>, vector<16x128xf32> -> vector<16x128xf32>
    %40 = vector.broadcast %37 : vector<1x128xf32> to vector<16x128xf32>
    %41 = arith.addf %39, %40 : vector<16x128xf32>
    %cst_30 = arith.constant 0.000000e+00 : f32
    %42 = vector.broadcast %cst_30 : f32 to vector<16x128xf32>
    %43 = arith.maximumf %41, %42 : vector<16x128xf32>
    %c640 = arith.constant 640 : index
    %c0_31 = arith.constant 0 : index
    %44 = vector.load %arg3[%c640, %c0_31] : memref<768x512xf32, #tpu.memory_space<vmem>>, vector<128x512xf32>
    %c5 = arith.constant 5 : index
    %c0_32 = arith.constant 0 : index
    %45 = vector.load %arg4[%c5, %c0_32] : memref<8x512xf32, #tpu.memory_space<vmem>>, vector<1x512xf32>
    %cst_33 = arith.constant dense<0.000000e+00> : vector<16x128xf32>
    %46 = tpu.matmul %1, %43, %cst_33 {dimension_numbers = #tpu.dot_dimension_numbers<[1], [0], [0], [1], [0, 0, 1, 1], [], []>} : vector<16x16xf32>, vector<16x128xf32>, vector<16x128xf32> -> vector<16x128xf32>
    %cst_34 = arith.constant dense<0.000000e+00> : vector<16x512xf32>
    %47 = tpu.matmul %46, %44, %cst_34 {dimension_numbers = #tpu.dot_dimension_numbers<[1], [0], [0], [1], [0, 0, 1, 1], [], []>} : vector<16x128xf32>, vector<128x512xf32>, vector<16x512xf32> -> vector<16x512xf32>
    %48 = vector.broadcast %45 : vector<1x512xf32> to vector<16x512xf32>
    %49 = arith.addf %47, %48 : vector<16x512xf32>
    %cst_35 = arith.constant 0.000000e+00 : f32
    %50 = vector.broadcast %cst_35 : f32 to vector<16x512xf32>
    %51 = arith.maximumf %49, %50 : vector<16x512xf32>
    %52 = math.tanh %51 : vector<16x512xf32>
    %c0_36 = arith.constant 0 : index
    %c0_37 = arith.constant 0 : index
    %c0_38 = arith.constant 0 : index
    %53 = vector.load %arg6[%c0_36, %c0_37, %c0_38] : memref<1x16x512xf32, #tpu.memory_space<vmem>>, vector<1x16x512xf32>
    %54 = vector.shape_cast %53 : vector<1x16x512xf32> to vector<16x512xf32>
    %55 = vector.shape_cast %52 : vector<16x512xf32> to vector<1x16x512xf32>
    tpu.vector_store %arg6[%c0_36, %c0_37, %c0_38], %55 {strides = array<i32>} : memref<1x16x512xf32, #tpu.memory_space<vmem>>, vector<1x16x512xf32>,
    %cst_39 = arith.constant dense<0xFF800000> : vector<512xf32>
    %56 = vector.multi_reduction <maximumf>, %52, %cst_39 [0] : vector<16x512xf32> to vector<512xf32>
    %57 = vector.shape_cast %56 : vector<512xf32> to vector<1x512xf32>
    %58 = arith.mulf %57, %57 : vector<1x512xf32>
    %59 = vector.shape_cast %58 : vector<1x512xf32> to vector<1x1x512xf32>
    %cst_40 = arith.constant dense<0.000000e+00> : vector<1xf32>
    %60 = vector.multi_reduction <add>, %59, %cst_40 [1, 2] : vector<1x1x512xf32> to vector<1xf32>
    %61 = vector.shape_cast %60 : vector<1xf32> to vector<1x1x1xf32>
    %62 = vector.extract %61[0, 0, 0] : f32 from vector<1x1x1xf32>
    %cst_41 = arith.constant 9.99999996E-13 : f32
    %63 = arith.maximumf %62, %cst_41 : f32
    %64 = math.rsqrt %63 : f32
    %65 = vector.broadcast %64 : f32 to vector<1x512xf32>
    %66 = arith.mulf %57, %65 : vector<1x512xf32>
    %c0_42 = arith.constant 0 : index
    %c0_43 = arith.constant 0 : index
    %c0_44 = arith.constant 0 : index
    %67 = vector.load %arg5[%c0_42, %c0_43, %c0_44] : memref<1x1x512xf32, #tpu.memory_space<vmem>>, vector<1x1x512xf32>
    %68 = vector.shape_cast %67 : vector<1x1x512xf32> to vector<1x512xf32>
    %69 = vector.shape_cast %66 : vector<1x512xf32> to vector<1x1x512xf32>
    tpu.vector_store %arg5[%c0_42, %c0_43, %c0_44], %69 {strides = array<i32>} : memref<1x1x512xf32, #tpu.memory_space<vmem>>, vector<1x1x512xf32>,
    return
  }
  func.func @transform_0(%arg0: i32) -> (i32, i32, i32) {
    %c0_i32 = arith.constant 0 : i32
    %c0_i32_0 = arith.constant 0 : i32
    %c0_i32_1 = arith.constant 0 : i32
    return %arg0, %c0_i32, %c0_i32_0 : i32, i32, i32
  }
  func.func @transform_1(%arg0: i32) -> (i32, i32, i32) {
    %c0_i32 = arith.constant 0 : i32
    %c0_i32_0 = arith.constant 0 : i32
    %c0_i32_1 = arith.constant 0 : i32
    return %arg0, %c0_i32, %c0_i32_0 : i32, i32, i32
  }
  func.func @transform_2(%arg0: i32) -> (i32, i32) {
    %c0_i32 = arith.constant 0 : i32
    %c0_i32_0 = arith.constant 0 : i32
    %c0_i32_1 = arith.constant 0 : i32
    return %c0_i32, %c0_i32_0 : i32, i32
  }
  func.func @transform_3(%arg0: i32) -> (i32, i32) {
    %c0_i32 = arith.constant 0 : i32
    %c0_i32_0 = arith.constant 0 : i32
    %c0_i32_1 = arith.constant 0 : i32
    return %c0_i32, %c0_i32_0 : i32, i32
  }
  func.func @transform_4(%arg0: i32) -> (i32, i32, i32) {
    %c0_i32 = arith.constant 0 : i32
    %c0_i32_0 = arith.constant 0 : i32
    %c0_i32_1 = arith.constant 0 : i32
    return %arg0, %c0_i32, %c0_i32_0 : i32, i32, i32
  }
  func.func @transform_5(%arg0: i32) -> (i32, i32, i32) {
    %c0_i32 = arith.constant 0 : i32
    %c0_i32_0 = arith.constant 0 : i32
    %c0_i32_1 = arith.constant 0 : i32
    return %arg0, %c0_i32, %c0_i32_0 : i32, i32, i32
  }
}

</mosaic_0001>

<bundles_post_ra>
// kernel: gcn_forward.1
= control target key start
LH: loop header
LB: loop body
LE: loop exit
PB: predicated region body
PF: predicated region fallthrough
CT: control target
= control target key end

     0   :  { %11 = vsyncpa [#allocation3], 0  ;;  %s3061_s0 = inlined_call_operand.hbm [shape: f32[2,16,16], index: 0, kind: input, shape index: {}]   ;;  %s3062_s1 = inlined_call_operand.vmem [shape: f32[2,16,128], index: 1, kind: input, shape index: {}]   ;;  %s3063_s2 = inlined_call_operand.hbm [shape: f32[768,512], index: 2, kind: input, shape index: {}]   ;;  %s3064_s3 = inlined_call_operand.hbm [shape: f32[8,512], index: 3, kind: input, shape index: {}]   ;;  %s3065_s4 = inlined_call_operand.hbm [shape: f32[2,1,512], index: 4, kind: output, shape index: {0}]   ;;  %s3066_s5 = inlined_call_operand.hbm [shape: f32[2,16,512], index: 5, kind: output, shape index: {1}]  }
   0x1   :  { %13 = vsyncpa [#allocation3 + $0x1], 0 }
   0x2   :  { %14 = vsyncpa [#allocation6], 0 }
   0x3   :  { %15 = vsyncpa [#allocation4], 0 }
   0x4   :  { %17 = vsyncpa [#allocation4 + $0x1], 0 }
   0x5   :  { %18 = vsyncpa [#allocation10], 0 }
   0x6   :  { %20 = vsyncpa [#allocation10 + $0x1], 0  ;;  %s2714_s18 = smov 0   ;;  %s2716_s19 = smov 0  }
   0x7   :  { %s2718_s20 = smov 0   ;;  %s2720_s21 = smov 0  }
   0x8 LB: > { %s2735_s22 = sadd.s32 4294967295, %s2668_s21   ;;  %s1758_s23 = sadd.s32 4294967294, %s2668_s21   ;;  %s2668_s21 = sphi %s2720_s21, %s3086_s21   ;;  %s2664_s20 = sphi %s2718_s20, %s3085_s20   ;;  %s2660_s19 = sphi %s2716_s19, %s3084_s19   ;;  %s2656_s18 = sphi %s2714_s18, %s3083_s18  }
   0x9   : > { %p46_p0 = scmp.ne.s32.totalorder %s2660_s19, %s2656_s18  ;;  %p3067_p1 = scmp.eq.s32.totalorder %s2735_s22, 0 }
   0xa   : > { %p144_p3 = scmp.eq.s32.totalorder %s1758_s23, 1  ;;  %p1759_p5 = scmp.ge.s32.totalorder %s2668_s21, 1 }
   0xb   : > { %p2744_p4 = por %p3067_p1, %p46_p0  ;;  %p177_p7 = scmp.lt.s32.totalorder %s2668_s21, 3 }
   0xc   : > { %p2749_p6 = por %p144_p3, %p46_p0  ;;  %s2670_s27 = smov [#allocation5]  }
   0xd   : > { %s3070_s24 = scalar_select %p2744_p4, 1, 0 }
   0xe   : > { %s3071_s25 = scalar_select %p2749_p6, 1, 0 }
   0xf   : > { %p2754_p8 = pnand %p1759_p5, %p177_p7  ;;  %s189_s28 = sshll.u32 %s2670_s27, 4  ;;  %s2758_s28 = int_to_ptr.vmem [resolvable:$true] %s189_s28 }
  0x10   : > { %s2671_s30 = smov [#allocation7]   ;;  %s2480_s9 = scalar_lea.hbm %s3063_s2, 49152 }
  0x11   : > { %p2395_p9 = pneg %p2754_p8  ;;  %s203_s6 = sshll.u32 %s2671_s30, 4  ;;  %s2769_s6 = int_to_ptr.vmem [resolvable:$true] %s203_s6 }
  0x12   : > { %p2481_p12 = scmp.ne.s32.totalorder %s3063_s2, %s2480_s9  ;;  %p2487_p5 = scmp.lt.u32.totalorder %s2480_s9, %s3063_s2 }
  0x13   : > { %p2765_p11 = pnand %p2395_p9, %p3067_p1 }
  0x15   : > { %p2482_p13 = pneg %p2765_p11 }
  0x17   : > { %p2483_p0 = pnand %p2482_p13, %p2481_p12 }
  0x19   : > { %p2484_p3 = pneg %p2483_p0 }
  0x1b   : > { %p2489_p7 = pnand %p2487_p5, %p2484_p3 }
  0x1d   : > { %2492 = shalt.err (!%p2489_p7)
}
  0x1e   : > { %s2493_s14 = scalar_lea.vmem %s2758_s28, 49152  ;;  %p2501_p2 = scmp.lt.s32.totalorder %s2758_s28, %s2758_s28 }
  0x1f   : > { %p2494_p9 = scmp.ne.s32.totalorder %s2758_s28, %s2493_s14  ;;  %p2502_p12 = scmp.lt.s32.totalorder %s2493_s14, %s2493_s14 }
  0x21   : > { %p2496_p10 = pnand %p2494_p9, %p2482_p13  ;;  %p2503_p0 = por %p2502_p12, %p2501_p2 }
  0x23   : > { %p2497_p1 = pneg %p2496_p10 }
  0x25   : > { %p2504_p6 = pnand %p2503_p0, %p2497_p1 }
  0x27   : > { %2507 = shalt.err (!%p2504_p6)
}
  0x28   : > { %s2672_s15 = smov 512   ;;  %s2673_s16 = smov 32  }
  0x29   : > { %2398 = dma.hbm_to_vmem [thread:$0]  (!%p2765_p11), %s3063_s2, 49152, %s2758_s28, [#allocation6], %s2672_s15, %s2672_s15, %s2673_s16  }
  0x2a   : > { %s2508_s7 = scalar_lea.hbm %s3064_s3, 512 }
  0x2b   : > { %p2509_p2 = scmp.ne.s32.totalorder %s3064_s3, %s2508_s7  ;;  %p2515_p10 = scmp.lt.u32.totalorder %s2508_s7, %s3064_s3 }
  0x2d   : > { %p2511_p1 = pnand %p2509_p2, %p2482_p13 }
  0x2f   : > { %p2512_p6 = pneg %p2511_p1 }
  0x31   : > { %p2517_p3 = pnand %p2515_p10, %p2512_p6 }
  0x33   : > { %2520 = shalt.err (!%p2517_p3)
}
  0x34   : > { %s2521_s28 = scalar_lea.vmem %s2769_s6, 512  ;;  %p2529_p12 = scmp.lt.s32.totalorder %s2769_s6, %s2769_s6 }
  0x35   : > { %p2522_p5 = scmp.ne.s32.totalorder %s2769_s6, %s2521_s28  ;;  %p2530_p0 = scmp.lt.s32.totalorder %s2521_s28, %s2521_s28 }
  0x37   : > { %p2524_p7 = pnand %p2522_p5, %p2482_p13  ;;  %p2531_p2 = por %p2530_p0, %p2529_p12 }
  0x39   : > { %p2525_p9 = pneg %p2524_p7 }
  0x3b   : > { %p2532_p1 = pnand %p2531_p2, %p2525_p9 }
  0x3d   : > { %2535 = shalt.err (!%p2532_p1)
}
  0x3e   : > { %2401 = dma.hbm_to_vmem [thread:$0]  (!%p2765_p11), %s3064_s3, 512, %s2769_s6, [#allocation6]  }
  0x3f   : > { %s2824_s14 = sadd.s32 1, %s2668_s21   ;;  %s33_s29 = sadd.s32 1, %s2664_s20 }
  0x40   : > { %s30_s15 = ssub.s32 %s2668_s21, %s2824_s14  ;;  %p40_p13 = scmp.ne.s32.totalorder %s2664_s20, %s2660_s19 }
  0x41   : > { %p31_p6 = scmp.eq.s32.totalorder %s30_s15, 0  ;;  %p41_p10 = scmp.eq.s32.totalorder %s2668_s21, 0 }
  0x42   : > { %p3074_p3 = scmp.eq.s32.totalorder %s2735_s22, 1  ;;  %p2415_p7 = scmp.lt.s32.totalorder %s2668_s21, 2 }
  0x43   : > { %s2840_s17 = scalar_select %p31_p6, %s2664_s20, %s33_s29  }
  0x44   : > { %p2834_p5 = por %p3074_p3, %p40_p13  ;;  %p42_p9 = por %p41_p10, %p40_p13 }
  0x45   : > { %s214_s23 = sand.u32 1, %s2664_s20   ;;  %s1794_s6 = sshll.u32 %s2668_s21, 8 }
  0x46   : > { %s3075_s16 = scalar_select %p2834_p5, 1, 0 }
  0x47   : > { %s1763_s27 = sshll.u32 %s214_s23, 4  ;;  %s2847_s8 = scalar_lea.hbm %s3061_s0, %s1794_s6 }
  0x48   : > { %s218_s9 = scalar_lea.vmem [#allocation2], %s1763_s27  ;;  %p2851_p11 = pnand %p2415_p7, %p42_p9 }
  0x49   : > { %s225_s10 = sshll.u32 %s218_s9, 4  ;;  %s2855_s28 = scalar_lea.sflag [#allocation3], %s214_s23  ;;  %s2849_s10 = int_to_ptr.vmem [resolvable:$true] %s225_s10 }
  0x4a   : > { %s2536_s12 = scalar_lea.hbm %s2847_s8, 256  ;;  %p2538_p0 = pneg %p2851_p11 }
  0x4b   : > { %p2537_p12 = scmp.ne.s32.totalorder %s2847_s8, %s2536_s12  ;;  %s2541_s15 = scalar_lea.hbm %s3061_s0, 512 }
  0x4c   : > { %p2542_p13 = scmp.lt.u32.totalorder %s2847_s8, %s3061_s0  ;;  %p2543_p6 = scmp.lt.u32.totalorder %s2541_s15, %s2536_s12 }
  0x4d   : > { %p2539_p2 = pnand %p2538_p0, %p2537_p12  ;;  %p2545_p3 = scmp.lt.u32.totalorder %s2536_s12, %s2847_s8 }
  0x4e   : > { %p2544_p10 = por %p2543_p6, %p2542_p13 }
  0x4f   : > { %p2540_p1 = pneg %p2539_p2 }
  0x50   : > { %p2546_p7 = por %p2545_p3, %p2544_p10 }
  0x52   : > { %p2547_p9 = pnand %p2546_p7, %p2540_p1 }
  0x54   : > { %2550 = shalt.err (!%p2547_p9)
}
  0x55   : > { %s2551_s23 = scalar_lea.vmem %s2849_s10, 256  ;;  %s2674_s30 = smov [#allocation2]  }
  0x56   : > { %p2552_p12 = scmp.ne.s32.totalorder %s2849_s10, %s2551_s23  ;;  %s2556_s7 = sshll.u32 %s2674_s30, 4  ;;  %s2557_s7 = int_to_ptr.vmem [resolvable:$false] %s2556_s7 }
  0x57   : > { %s2558_s9 = scalar_lea.vmem %s2557_s7, 512  ;;  %p2559_p4 = scmp.lt.s32.totalorder %s2849_s10, %s2557_s7 }
  0x58   : > { %p2554_p2 = pnand %p2552_p12, %p2538_p0  ;;  %p2560_p13 = scmp.lt.s32.totalorder %s2558_s9, %s2551_s23 }
  0x5a   : > { %p2555_p5 = pneg %p2554_p2  ;;  %p2561_p6 = por %p2560_p13, %p2559_p4 }
  0x5c   : > { %p2562_p10 = pnand %p2561_p6, %p2555_p5 }
  0x5e   : > { %2565 = shalt.err (!%p2562_p10)
}
  0x5f   : > { %s2675_s12 = smov 128   ;;  %s2676_s13 = smov 8  }
  0x60   : > { %2405 = dma.hbm_to_vmem [thread:$0]  (!%p2851_p11), %s2847_s8, 256, %s2849_s10, %s2855_s28, %s2675_s12, %s2675_s12, %s2676_s13  }
  0x61   : > { %245 = sbr.rel (%p2754_p8) target bundleno = 3095 (0xc17), region = 36  ;;  %s2886_s29 = sand.u32 (!%p2754_p8), 1, %s2660_s19  }
  0x62   : > { %s1767_s15 = sshll.u32 (!%p2754_p8), %s2886_s29, 4  ;;  %s248_s27 = scalar_lea.sflag (!%p2754_p8), [#allocation3], %s2886_s29 }
  0x63   : > { %s2890_s6 = scalar_lea.vmem (!%p2754_p8), [#allocation2], %s1767_s15  ;;  %p3077_p4 = scmp.ne.s32.totalorder (!%p2754_p8), %s3070_s24, 0 }
  0x68   : > { %2639 = dma.done.wait (%p3077_p4), %s248_s27, 256  }
  0x69   : > { %2641 = vsyncadd (%p3077_p4), %s248_s27, 4294967040  ;;  %p3078_p5 = scmp.eq.s32.totalorder %s2735_s22, 0 }
  0x6b   : > { %2643 = dma.done.wait (%p3078_p5), [#allocation6], 49664   ;;  %p3079_p8 = pmov %p3078_p5 }
  0x6c   : > { %p296_p11 = scmp.lt.s32.totalorder %s2735_s22, 1  ;;  %v305_v0 = vld [vmem:[#allocation5] sm:$0xff]  ;;  %vm397_vm0 = vcmask 130048   ;;  %v2915_v35 = vld [vmem:[%s2890_s6 + $0x8] sm:$0xff]  ;;  %s1771_s28 = sshll.u32 %s2886_s29, 6  ;;  %vm1529_vm1 = vcmask 1040384  }
  0x6d   : > { %2645 = vsyncadd (%p3079_p8), [#allocation6], 4294917632  ;;  %v306_v1 = vld [vmem:[#allocation5 + $0x20] sm:$0xff]  ;;  %s2947_s23 = scalar_lea.vmem [#allocation9], %s1771_s28  ;;  %s1797_s30 = sshll.u32 %s2735_s22, 10 }
  0x6e   : > { %s297_s26 = scalar_select %p296_p11, %s2735_s22, 1  ;;  %v307_v2 = vld [vmem:[#allocation5 + $0x40] sm:$0xff]  ;;  %v2129_v3 = vpack.c.bf16 %v306_v1, %v305_v0 }
  0x6f   : > { %v308_v4 = vld [vmem:[#allocation5 + $0x60] sm:$0xff]  ;;  %s1622_s7 = sshll.u32 %s2947_s23, 4  ;;  %s2978_s13 = scalar_lea.hbm %s3066_s5, %s1797_s30  ;;  %s2980_s7 = int_to_ptr.vmem [resolvable:$true] %s1622_s7 }
  0x70   : > { %s1795_s8 = sshll.u32 %s297_s26, 4  ;;  %v2133_v5 = vpack.c.bf16 %v308_v4, %v307_v2  ;;  %v309_v6 = vld [vmem:[#allocation5 + $0x80] sm:$0xff]  ;;  %2130 = vmatprep.subr.bf16.mxu0 %v2129_v3  ;;  %s1595_s15 = scalar_lea.sflag [#allocation10], %s2886_s29 }
  0x71   : > { %v310_v7 = vld [vmem:[#allocation5 + $0xa0] sm:$0xff]  ;;  %s2905_s11 = scalar_lea.vmem %s3062_s1, %s1795_s8  ;;  %2132 = vmatpush3.bf16.msra.mxu0 %v2129_v3  ;;  %s2566_s27 = scalar_lea.vmem %s2980_s7, 1024 }
  0x72   : > { %2134 = vmatprep.subr.bf16.mxu0 %v2133_v5  ;;  %v2137_v8 = vpack.c.bf16 %v310_v7, %v309_v6  ;;  %v303_v9 = vld [vmem:[%s2905_s11] sm:$0xff]  ;;  %v304_v25 = vld [vmem:[%s2905_s11 + $0x8] sm:$0xff]  ;;  %p2567_p0 = scmp.ne.s32.totalorder %s2980_s7, %s2566_s27  ;;  %p3080_p1 = scmp.ne.s32.totalorder %s3075_s16, 0 }
  0x73   : > { %v311_v10 = vld [vmem:[#allocation5 + $0xc0] sm:$0xff]  ;;  %1944 = vmatprep.mubr.f32.mxu0 %v303_v9 }
  0x74   : > { %v312_v11 = vld [vmem:[#allocation5 + $0xe0] sm:$0xff]  ;;  %p2568_p3 = pnand %p2567_p0, %p3080_p1 }
  0x75   : > { %2136 = vmatpush3.bf16.msra.mxu0 %v2133_v5  ;;  %v2141_v12 = vpack.c.bf16 %v312_v11, %v311_v10  ;;  %v313_v13 = vld [vmem:[#allocation5 + $0x100] sm:$0xff] }
  0x76   : > { %2138 = vmatprep.subr.bf16.mxu0 %v2137_v8  ;;  %v314_v14 = vld [vmem:[#allocation5 + $0x120] sm:$0xff]  ;;  %p2569_p7 = pneg %p2568_p3 }
  0x77   : > { %v2145_v15 = vpack.c.bf16 %v314_v14, %v313_v13  ;;  %v315_v16 = vld [vmem:[#allocation5 + $0x140] sm:$0xff] }
  0x78   : > { %v316_v17 = vld [vmem:[#allocation5 + $0x160] sm:$0xff] }
  0x79   : > { %2140 = vmatpush3.bf16.msra.mxu0 %v2137_v8  ;;  %v2149_v18 = vpack.c.bf16 %v316_v17, %v315_v16  ;;  %v317_v19 = vld [vmem:[#allocation5 + $0x180] sm:$0xff] }
  0x7a   : > { %2142 = vmatprep.subr.bf16.mxu0 %v2141_v12  ;;  %v318_v20 = vld [vmem:[#allocation5 + $0x1a0] sm:$0xff] }
  0x7b   : > { %v2153_v21 = vpack.c.bf16 %v318_v20, %v317_v19  ;;  %v319_v22 = vld [vmem:[#allocation5 + $0x1c0] sm:$0xff] }
  0x7c   : > { %v320_v23 = vld [vmem:[#allocation5 + $0x1e0] sm:$0xff] }
  0x7d   : > { %2144 = vmatpush3.bf16.msra.mxu0 %v2141_v12  ;;  %v2157_v24 = vpack.c.bf16 %v320_v23, %v319_v22  ;;  %v2910_v26 = vld [vmem:[%s2890_s6] sm:$0xff]  ;;  %s2678_s6 = smov [#allocation9]  }
  0x7e   : > { %2146 = vmatprep.subr.bf16.mxu0 %v2145_v15  ;;  %1951 = vmatprep.mubr.msk.f32.mxu1 %vm397_vm0, %v2910_v26  ;;  %v481_v27 = vld [vmem:[#allocation5 + $0x200] sm:$0xff]  ;;  %s2570_s26 = sshll.u32 %s2678_s6, 4  ;;  %s2571_s26 = int_to_ptr.vmem [resolvable:$false] %s2570_s26 }
  0x7f   : > { %v482_v28 = vld [vmem:[#allocation5 + $0x220] sm:$0xff]  ;;  %s2572_s8 = scalar_lea.vmem %s2571_s26, 2048  ;;  %p2573_p9 = scmp.lt.s32.totalorder %s2980_s7, %s2571_s26 }
  0x80   : > { %v2165_v32 = vpack.c.bf16 %v482_v28, %v481_v27  ;;  %v483_v33 = vld [vmem:[#allocation5 + $0x240] sm:$0xff]  ;;  %p2574_p12 = scmp.lt.s32.totalorder %s2572_s8, %s2566_s27 }
  0x81   : > { %2148 = vmatpush3.bf16.msra.mxu0 %v2145_v15  ;;  %v484_v34 = vld [vmem:[#allocation5 + $0x260] sm:$0xff] }
  0x82   : > { %2150 = vmatprep.subr.bf16.mxu0 %v2149_v18  ;;  %v2169_v36 = vpack.c.bf16 %v484_v34, %v483_v33  ;;  %v485_v37 = vld [vmem:[#allocation5 + $0x280] sm:$0xff]  ;;  %p2575_p2 = por %p2574_p12, %p2573_p9 }
  0x83   : > { %v486_v38 = vld [vmem:[#allocation5 + $0x2a0] sm:$0xff] }
  0x84   : > { %v2173_v39 = vpack.c.bf16 %v486_v38, %v485_v37  ;;  %v487_v40 = vld [vmem:[#allocation5 + $0x2c0] sm:$0xff]  ;;  %p2576_p13 = pnand %p2575_p2, %p2569_p7 }
  0x85   : > { %2152 = vmatpush3.bf16.msra.mxu0 %v2149_v18  ;;  %v488_v41 = vld [vmem:[#allocation5 + $0x2e0] sm:$0xff] }
  0x86   : > { %2154 = vmatprep.subr.bf16.mxu0 %v2153_v21  ;;  %v2177_v42 = vpack.c.bf16 %v488_v41, %v487_v40  ;;  %v489_v43 = vld [vmem:[#allocation5 + $0x300] sm:$0xff] }
  0x87   : > { %v490_v44 = vld [vmem:[#allocation5 + $0x320] sm:$0xff] }
  0x88   : > { %v2181_v45 = vpack.c.bf16 %v490_v44, %v489_v43  ;;  %v491_v46 = vld [vmem:[#allocation5 + $0x340] sm:$0xff] }
  0x89   : > { %2156 = vmatpush3.bf16.msra.mxu0 %v2153_v21  ;;  %v492_v47 = vld [vmem:[#allocation5 + $0x360] sm:$0xff] }
  0x8a   : > { %2158 = vmatprep.subr.bf16.mxu0 %v2157_v24  ;;  %v2185_v48 = vpack.c.bf16 %v492_v47, %v491_v46  ;;  %v493_v49 = vld [vmem:[#allocation5 + $0x380] sm:$0xff] }
  0x8b   : > { %v494_v50 = vld [vmem:[#allocation5 + $0x3a0] sm:$0xff] }
  0x8c   : > { %v2189_v51 = vpack.c.bf16 %v494_v50, %v493_v49  ;;  %v495_v52 = vld [vmem:[#allocation5 + $0x3c0] sm:$0xff] }
  0x8d   : > { %2160 = vmatpush3.bf16.msra.mxu0 %v2157_v24  ;;  %v496_v53 = vld [vmem:[#allocation5 + $0x3e0] sm:$0xff] }
  0x8e   : > { %v2193_v54 = vpack.c.bf16 %v496_v53, %v495_v52  ;;  %v321_v55 = vld [vmem:[#allocation7] ss:$0 sm:$0xff] }
  0x8f   : > { %v650_v62 = vld [vmem:[#allocation5 + $0x400] sm:$0xff] }
  0x90   : > { %1945 = vmatmul.mubr.f32.vlgmr.msra.gmra.mrb[0].mxu0 %v304_v25  ;;  %v651_v63 = vld [vmem:[#allocation5 + $0x420] sm:$0xff] }
  0x91   : > { %v652_v0 = vld [vmem:[#allocation5 + $0x440] sm:$0xff]  ;;  %v2201_v1 = vpack.c.bf16 %v651_v63, %v650_v62 }
  0x92   : > { %v653_v2 = vld [vmem:[#allocation5 + $0x460] sm:$0xff] }
  0x93   : > { %v2205_v3 = vpack.c.bf16 %v653_v2, %v652_v0  ;;  %v654_v4 = vld [vmem:[#allocation5 + $0x480] sm:$0xff]  ;;  %2202 = vmatprep.subr.bf16.mxu0 %v2201_v1 }
  0x94   : > { %v655_v5 = vld [vmem:[#allocation5 + $0x4a0] sm:$0xff]  ;;  %2204 = vmatpush3.bf16.msra.mxu0 %v2201_v1 }
  0x95   : > { %2206 = vmatprep.subr.bf16.mxu0 %v2205_v3  ;;  %v2209_v6 = vpack.c.bf16 %v655_v5, %v654_v4  ;;  %v656_v7 = vld [vmem:[#allocation5 + $0x4c0] sm:$0xff] }
  0x96   : > { %v657_v8 = vld [vmem:[#allocation5 + $0x4e0] sm:$0xff] }
  0x97   : > { %v2213_v9 = vpack.c.bf16 %v657_v8, %v656_v7  ;;  %v658_v10 = vld [vmem:[#allocation5 + $0x500] sm:$0xff] }
  0x98   : > { %2208 = vmatpush3.bf16.msra.mxu0 %v2205_v3  ;;  %v659_v11 = vld [vmem:[#allocation5 + $0x520] sm:$0xff] }
  0x99   : > { %2210 = vmatprep.subr.bf16.mxu0 %v2209_v6  ;;  %v2217_v12 = vpack.c.bf16 %v659_v11, %v658_v10  ;;  %v660_v13 = vld [vmem:[#allocation5 + $0x540] sm:$0xff] }
  0x9a   : > { %v661_v14 = vld [vmem:[#allocation5 + $0x560] sm:$0xff] }
  0x9b   : > { %v2221_v15 = vpack.c.bf16 %v661_v14, %v660_v13  ;;  %v662_v16 = vld [vmem:[#allocation5 + $0x580] sm:$0xff] }
  0x9c   : > { %2212 = vmatpush3.bf16.msra.mxu0 %v2209_v6  ;;  %v663_v17 = vld [vmem:[#allocation5 + $0x5a0] sm:$0xff] }
  0x9d   : > { %2214 = vmatprep.subr.bf16.mxu0 %v2213_v9  ;;  %v2225_v18 = vpack.c.bf16 %v663_v17, %v662_v16  ;;  %v664_v22 = vld [vmem:[#allocation5 + $0x5c0] sm:$0xff] }
  0x9e   : > { %v665_v23 = vld [vmem:[#allocation5 + $0x5e0] sm:$0xff] }
  0x9f   : > { %v2229_v24 = vpack.c.bf16 %v665_v23, %v664_v22  ;;  %v497_v25 = vld [vmem:[#allocation7 + $0x1] ss:$0 sm:$0xff] }
  0xa0   : > { %2216 = vmatpush3.bf16.msra.mxu0 %v2213_v9  ;;  %v819_v33 = vld [vmem:[#allocation5 + $0x600] sm:$0xff] }
  0xa1   : > { %2218 = vmatprep.subr.bf16.mxu0 %v2217_v12  ;;  %v820_v34 = vld [vmem:[#allocation5 + $0x620] sm:$0xff] }
  0xa2   : > { %v821_v40 = vld [vmem:[#allocation5 + $0x640] sm:$0xff] }
  0xa3   : > { %v822_v41 = vld [vmem:[#allocation5 + $0x660] sm:$0xff] }
  0xa4   : > { %2220 = vmatpush3.bf16.msra.mxu0 %v2217_v12  ;;  %v823_v43 = vld [vmem:[#allocation5 + $0x680] sm:$0xff] }
  0xa5   : > { %2222 = vmatprep.subr.bf16.mxu0 %v2221_v15  ;;  %v824_v44 = vld [vmem:[#allocation5 + $0x6a0] sm:$0xff] }
  0xa6   : > { %v825_v46 = vld [vmem:[#allocation5 + $0x6c0] sm:$0xff] }
  0xa7   : > { %v826_v47 = vld [vmem:[#allocation5 + $0x6e0] sm:$0xff] }
  0xa8   : > { %2224 = vmatpush3.bf16.msra.mxu0 %v2221_v15  ;;  %v827_v49 = vld [vmem:[#allocation5 + $0x700] sm:$0xff] }
  0xa9   : > { %2226 = vmatprep.subr.bf16.mxu0 %v2225_v18  ;;  %v828_v50 = vld [vmem:[#allocation5 + $0x720] sm:$0xff] }
  0xaa   : > { %v829_v52 = vld [vmem:[#allocation5 + $0x740] sm:$0xff] }
  0xab   : > { %v830_v53 = vld [vmem:[#allocation5 + $0x760] sm:$0xff] }
  0xac   : > { %2228 = vmatpush3.bf16.msra.mxu0 %v2225_v18  ;;  %v988_v4 = vld [vmem:[#allocation5 + $0x800] sm:$0xff] }
  0xad   : > { %2230 = vmatprep.subr.bf16.mxu0 %v2229_v24  ;;  %v989_v5 = vld [vmem:[#allocation5 + $0x820] sm:$0xff] }
  0xae   : > { %v990_v6 = vld [vmem:[#allocation5 + $0x840] sm:$0xff]  ;;  %v2273_v7 = vpack.c.bf16 %v989_v5, %v988_v4  ;;  %v1191_v5 = vld [vmem:[#allocation5 + $0xb10] sm:$0xff] }
  0xaf   : > { %v991_v8 = vld [vmem:[#allocation5 + $0x860] sm:$0xff] }
  0xb0   : > { %2232 = vmatpush3.bf16.msra.mxu0 %v2229_v24  ;;  %v2277_v9 = vpack.c.bf16 %v991_v8, %v990_v6  ;;  %v992_v10 = vld [vmem:[#allocation5 + $0x880] sm:$0xff]  ;;  %v1195_v6 = vld [vmem:[#allocation5 + $0xb30] sm:$0xff]  ;;  %v1200_v8 = vld [vmem:[#allocation5 + $0xb58] sm:$0xff] }
  0xb1   : > { %v993_v11 = vld [vmem:[#allocation5 + $0x8a0] sm:$0xff]  ;;  %2274 = vmatprep.subr.bf16.mxu0 %v2273_v7 }
  0xb2   : > { %v2281_v12 = vpack.c.bf16 %v993_v11, %v992_v10  ;;  %v994_v13 = vld [vmem:[#allocation5 + $0x8c0] sm:$0xff]  ;;  %v1199_v11 = vld [vmem:[#allocation5 + $0xb50] sm:$0xff] }
  0xb3   : > { %v995_v14 = vld [vmem:[#allocation5 + $0x8e0] sm:$0xff] }
  0xb4   : > { %v2285_v15 = vpack.c.bf16 %v995_v14, %v994_v13  ;;  %v996_v16 = vld [vmem:[#allocation5 + $0x900] sm:$0xff]  ;;  %v1208_v14 = vld [vmem:[#allocation5 + $0xb98] sm:$0xff] }
  0xb5   : > { %v997_v17 = vld [vmem:[#allocation5 + $0x920] sm:$0xff] }
  0xb6   : > { %v2289_v18 = vpack.c.bf16 %v997_v17, %v996_v16  ;;  %v1000_v22 = vld [vmem:[#allocation5 + $0x980] sm:$0xff]  ;;  %v1207_v17 = vld [vmem:[#allocation5 + $0xb90] sm:$0xff] }
  0xb7   : > { %v1001_v23 = vld [vmem:[#allocation5 + $0x9a0] sm:$0xff] }
  0xb8   : > { %v2297_v24 = vpack.c.bf16 %v1001_v23, %v1000_v22  ;;  %v1215_v23 = vld [vmem:[#allocation5 + $0xbd0] sm:$0xff] }
 0x163   : > { %v1946_v29 = vpop.f32.mrb[0].mxu0 }
 0x164   : > { %v388_v30 = vpop.f32.mrb[1].mxu0 }
 0x165   : > { %v2161_v31 = vpack.c.bf16 %v1946_v29, %v388_v30 }
 0x167   : > { %2162 = vmatprep.subr.bf16.mxu1 %v2161_v31 }
 0x168   : > { %2164 = vmatpush3.bf16.msra.mxu1 %v2161_v31 }
 0x169   : > { %2166 = vmatprep.subr.bf16.mxu1 %v2165_v32 }
 0x16b   : > { %1952 = vmatmul.mubr.msk.f32.vlgmr.msra.gmra.mrb[0].mxu1 %vm397_vm0, %v2915_v35 }
 0x16c   : > { %2168 = vmatpush3.bf16.msra.mxu1 %v2165_v32 }
 0x16d   : > { %2170 = vmatprep.subr.bf16.mxu1 %v2169_v36 }
 0x170   : > { %2172 = vmatpush3.bf16.msra.mxu1 %v2169_v36 }
 0x171   : > { %2174 = vmatprep.subr.bf16.mxu1 %v2173_v39 }
 0x174   : > { %2176 = vmatpush3.bf16.msra.mxu1 %v2173_v39  ;;  %v2237_v39 = vpack.c.bf16 %v820_v34, %v819_v33 }
 0x175   : > { %2178 = vmatprep.subr.bf16.mxu1 %v2177_v42 }
 0x178   : > { %2180 = vmatpush3.bf16.msra.mxu1 %v2177_v42  ;;  %v2241_v42 = vpack.c.bf16 %v822_v41, %v821_v40 }
 0x179   : > { %2182 = vmatprep.subr.bf16.mxu1 %v2181_v45 }
 0x17c   : > { %2184 = vmatpush3.bf16.msra.mxu1 %v2181_v45  ;;  %v2245_v45 = vpack.c.bf16 %v824_v44, %v823_v43  ;;  %v1160_v43 = vld [vmem:[#allocation5 + $0xa18] sm:$0xff] }
 0x17d   : > { %2186 = vmatprep.subr.bf16.mxu1 %v2185_v48  ;;  %v1164_v44 = vld [vmem:[#allocation5 + $0xa38] sm:$0xff] }
 0x180   : > { %2188 = vmatpush3.bf16.msra.mxu1 %v2185_v48  ;;  %v2249_v48 = vpack.c.bf16 %v826_v47, %v825_v46  ;;  %v1159_v46 = vld [vmem:[#allocation5 + $0xa10] sm:$0xff] }
 0x181   : > { %2190 = vmatprep.subr.bf16.mxu1 %v2189_v51  ;;  %v1163_v47 = vld [vmem:[#allocation5 + $0xa30] sm:$0xff] }
 0x184   : > { %2192 = vmatpush3.bf16.msra.mxu1 %v2189_v51  ;;  %v2253_v51 = vpack.c.bf16 %v828_v50, %v827_v49  ;;  %v1168_v49 = vld [vmem:[#allocation5 + $0xa58] sm:$0xff] }
 0x185   : > { %2194 = vmatprep.subr.bf16.mxu1 %v2193_v54  ;;  %v1172_v50 = vld [vmem:[#allocation5 + $0xa78] sm:$0xff] }
 0x188   : > { %2196 = vmatpush3.bf16.msra.mxu1 %v2193_v54  ;;  %v2257_v54 = vpack.c.bf16 %v830_v53, %v829_v52  ;;  %v1167_v52 = vld [vmem:[#allocation5 + $0xa50] sm:$0xff] }
 0x189   : > { %v1171_v53 = vld [vmem:[#allocation5 + $0xa70] sm:$0xff] }
 0x23e   : > { %v1953_v56 = vpop.f32.mrb[0].mxu1 }
 0x23f   : > { %v476_v57 = vadd.f32 %v1953_v56, %v321_v55  ;;  %v470_v58 = vpop.f32.mrb[1].mxu1  ;;  %v832_v56 = vld [vmem:[#allocation5 + $0x7a0] sm:$0xff] }
 0x240   : > { %v471_v59 = vadd.f32 %v470_v58, %v321_v55  ;;  %v831_v55 = vld [vmem:[#allocation5 + $0x780] sm:$0xff] }
 0x241   : > { %v480_v61 = vmax.f32 %v476_v57, 0.0  ;;  %v2261_v57 = vpack.c.bf16 %v832_v56, %v831_v55  ;;  %v833_v58 = vld [vmem:[#allocation5 + $0x7c0] sm:$0xff]  ;;  %v1176_v55 = vld [vmem:[#allocation5 + $0xa98] sm:$0xff] }
 0x242   : > { %v479_v60 = vmax.f32 %v471_v59, 0.0  ;;  %v834_v59 = vld [vmem:[#allocation5 + $0x7e0] sm:$0xff]  ;;  %v1180_v56 = vld [vmem:[#allocation5 + $0xab8] sm:$0xff] }
 0x244   : > { %1986 = vmatprep.mubr.f32.mxu1 %v479_v60  ;;  %v2265_v60 = vpack.c.bf16 %v834_v59, %v833_v58  ;;  %v1179_v58 = vld [vmem:[#allocation5 + $0xab0] sm:$0xff] }
 0x245   : > { %1987 = vmatmul.mubr.f32.vlgmr.msra.gmra.mrb[2].mxu1 %v480_v61  ;;  %v666_v61 = vld [vmem:[#allocation7 + $0x2] ss:$0 sm:$0xff] }
 0x246   : > { %1993 = vmatprep.mubr.msk.f32.mxu1 %vm397_vm0, %v2910_v26 }
 0x318   : > { %v1988_v19 = vpop.f32.mrb[2].mxu1 }
 0x319   : > { %v564_v20 = vpop.f32.mrb[3].mxu1 }
 0x31a   : > { %v2197_v21 = vpack.c.bf16 %v1988_v19, %v564_v20  ;;  %v998_v19 = vld [vmem:[#allocation5 + $0x940] sm:$0xff] }
 0x31b   : > { %v999_v20 = vld [vmem:[#allocation5 + $0x960] sm:$0xff] }
 0x31c   : > { %2198 = vmatprep.subr.bf16.mxu1 %v2197_v21 }
 0x31d   : > { %2200 = vmatpush3.bf16.msra.mxu1 %v2197_v21  ;;  %v2293_v21 = vpack.c.bf16 %v999_v20, %v998_v19  ;;  %v1216_v20 = vld [vmem:[#allocation5 + $0xbd8] sm:$0xff] }
 0x320   : > { %1994 = vmatmul.mubr.msk.f32.vlgmr.msra.gmra.mrb[4].mxu1 %vm397_vm0, %v2915_v35 }
 0x321   : > { %2035 = vmatprep.mubr.msk.f32.mxu1 %vm397_vm0, %v2910_v26 }
 0x3f3   : > { %v1995_v27 = vpop.f32.mrb[4].mxu1 }
 0x3f4   : > { %v645_v28 = vadd.f32 %v1995_v27, %v497_v25  ;;  %v639_v29 = vpop.f32.mrb[5].mxu1 }
 0x3f5   : > { %v640_v30 = vadd.f32 %v639_v29, %v497_v25  ;;  %v1002_v29 = vld [vmem:[#allocation5 + $0x9c0] sm:$0xff] }
 0x3f6   : > { %v649_v32 = vmax.f32 %v645_v28, 0.0 }
 0x3f7   : > { %v648_v31 = vmax.f32 %v640_v30, 0.0  ;;  %v1003_v30 = vld [vmem:[#allocation5 + $0x9e0] sm:$0xff] }
 0x3f9   : > { %2028 = vmatprep.mubr.f32.mxu0 %v648_v31  ;;  %v2301_v31 = vpack.c.bf16 %v1003_v30, %v1002_v29 }
 0x3fa   : > { %2029 = vmatmul.mubr.f32.vlgmr.msra.gmra.mrb[2].mxu0 %v649_v32  ;;  %v835_v32 = vld [vmem:[#allocation7 + $0x3] ss:$0 sm:$0xff] }
 0x3fb   : > { %2276 = vmatpush3.bf16.msra.mxu0 %v2273_v7  ;;  %v2363_v7 = vpack.c.bf16 %v1195_v6, %v1191_v5  ;;  %v1206_v5 = vld [vmem:[#allocation5 + $0xb88] sm:$0xff] }
 0x3fc   : > { %2278 = vmatprep.subr.bf16.mxu0 %v2277_v9  ;;  %v1210_v6 = vld [vmem:[#allocation5 + $0xba8] sm:$0xff] }
 0x3ff   : > { %2280 = vmatpush3.bf16.msra.mxu0 %v2277_v9  ;;  %v1204_v9 = vld [vmem:[#allocation5 + $0xb78] sm:$0xff] }
 0x400   : > { %2282 = vmatprep.subr.bf16.mxu0 %v2281_v12  ;;  %v2365_v10 = vpack.c.bf16 %v1204_v9, %v1200_v8  ;;  %v2337_v8 = vpack.c.bf16 %v1210_v6, %v1206_v5  ;;  %v1205_v9 = vld [vmem:[#allocation5 + $0xb80] sm:$0xff] }
 0x403   : > { %2284 = vmatpush3.bf16.msra.mxu0 %v2281_v12  ;;  %v1203_v12 = vld [vmem:[#allocation5 + $0xb70] sm:$0xff] }
 0x404   : > { %2286 = vmatprep.subr.bf16.mxu0 %v2285_v15  ;;  %v2367_v13 = vpack.c.bf16 %v1203_v12, %v1199_v11  ;;  %v1214_v11 = vld [vmem:[#allocation5 + $0xbc8] sm:$0xff] }
 0x405   : > { %v1218_v12 = vld [vmem:[#allocation5 + $0xbe8] sm:$0xff] }
 0x407   : > { %2288 = vmatpush3.bf16.msra.mxu0 %v2285_v15  ;;  %v1212_v15 = vld [vmem:[#allocation5 + $0xbb8] sm:$0xff] }
 0x408   : > { %2290 = vmatprep.subr.bf16.mxu0 %v2289_v18  ;;  %v2369_v16 = vpack.c.bf16 %v1212_v15, %v1208_v14  ;;  %v2341_v14 = vpack.c.bf16 %v1218_v12, %v1214_v11  ;;  %v1213_v15 = vld [vmem:[#allocation5 + $0xbc0] sm:$0xff] }
 0x40b   : > { %2292 = vmatpush3.bf16.msra.mxu0 %v2289_v18  ;;  %v1211_v18 = vld [vmem:[#allocation5 + $0xbb0] sm:$0xff] }
 0x40c   : > { %2294 = vmatprep.subr.bf16.mxu0 %v2293_v21  ;;  %v2371_v19 = vpack.c.bf16 %v1211_v18, %v1207_v17  ;;  %v2677_v18 = vmov 0.0  }
 0x40f   : > { %2296 = vmatpush3.bf16.msra.mxu0 %v2293_v21  ;;  %v1220_v21 = vld [vmem:[#allocation5 + $0xbf8] sm:$0xff] }
 0x410   : > { %2298 = vmatprep.subr.bf16.mxu0 %v2297_v24  ;;  %v2373_v22 = vpack.c.bf16 %v1220_v21, %v1216_v20  ;;  %v1299_v21 = vlaneseq }
 0x413   : > { %2300 = vmatpush3.bf16.msra.mxu0 %v2297_v24  ;;  %v1219_v24 = vld [vmem:[#allocation5 + $0xbf0] sm:$0xff] }
 0x414   : > { %2302 = vmatprep.subr.bf16.mxu0 %v2301_v31 }
 0x417   : > { %2304 = vmatpush3.bf16.msra.mxu0 %v2301_v31 }
 0x4cd   : > { %v2030_v36 = vpop.f32.mrb[2].mxu0 }
 0x4ce   : > { %v733_v37 = vpop.f32.mrb[3].mxu0 }
 0x4cf   : > { %v2233_v38 = vpack.c.bf16 %v2030_v36, %v733_v37 }
 0x4d1   : > { %2234 = vmatprep.subr.bf16.mxu1 %v2233_v38 }
 0x4d2   : > { %2236 = vmatpush3.bf16.msra.mxu1 %v2233_v38 }
 0x4d3   : > { %2238 = vmatprep.subr.bf16.mxu1 %v2237_v39 }
 0x4d5   : > { %2036 = vmatmul.mubr.msk.f32.vlgmr.msra.gmra.mrb[6].mxu1 %vm397_vm0, %v2915_v35 }
 0x4d6   : > { %2240 = vmatpush3.bf16.msra.mxu1 %v2237_v39 }
 0x4d7   : > { %2242 = vmatprep.subr.bf16.mxu1 %v2241_v42 }
 0x4da   : > { %2244 = vmatpush3.bf16.msra.mxu1 %v2241_v42 }
 0x4db   : > { %2246 = vmatprep.subr.bf16.mxu1 %v2245_v45 }
 0x4de   : > { %2248 = vmatpush3.bf16.msra.mxu1 %v2245_v45  ;;  %v2345_v45 = vpack.c.bf16 %v1164_v44, %v1160_v43 }
 0x4df   : > { %2250 = vmatprep.subr.bf16.mxu1 %v2249_v48 }
 0x4e0   : > { %2346 = vmatprep.subr.bf16.mxu0 %v2345_v45  ;;  %v1165_v45 = vld [vmem:[#allocation5 + $0xa40] sm:$0xff] }
 0x4e2   : > { %2252 = vmatpush3.bf16.msra.mxu1 %v2249_v48  ;;  %v2347_v48 = vpack.c.bf16 %v1163_v47, %v1159_v46  ;;  %v1169_v46 = vld [vmem:[#allocation5 + $0xa60] sm:$0xff]  ;;  %v1174_v47 = vld [vmem:[#allocation5 + $0xa88] sm:$0xff] }
 0x4e3   : > { %2254 = vmatprep.subr.bf16.mxu1 %v2253_v51 }
 0x4e6   : > { %2256 = vmatpush3.bf16.msra.mxu1 %v2253_v51  ;;  %v2349_v51 = vpack.c.bf16 %v1172_v50, %v1168_v49  ;;  %v2319_v49 = vpack.c.bf16 %v1169_v46, %v1165_v45 }
 0x4e7   : > { %2258 = vmatprep.subr.bf16.mxu1 %v2257_v54 }
 0x4ea   : > { %2260 = vmatpush3.bf16.msra.mxu1 %v2257_v54  ;;  %v2351_v54 = vpack.c.bf16 %v1171_v53, %v1167_v52  ;;  %v1177_v52 = vld [vmem:[#allocation5 + $0xaa0] sm:$0xff]  ;;  %v1182_v53 = vld [vmem:[#allocation5 + $0xac8] sm:$0xff] }
 0x4eb   : > { %2262 = vmatprep.subr.bf16.mxu1 %v2261_v57 }
 0x4ee   : > { %2264 = vmatpush3.bf16.msra.mxu1 %v2261_v57  ;;  %v2353_v57 = vpack.c.bf16 %v1180_v56, %v1176_v55 }
 0x4ef   : > { %2266 = vmatprep.subr.bf16.mxu1 %v2265_v60 }
 0x4f2   : > { %2268 = vmatpush3.bf16.msra.mxu1 %v2265_v60  ;;  %v1184_v60 = vld [vmem:[#allocation5 + $0xad8] sm:$0xff] }
 0x5a8   : > { %v2037_v62 = vpop.f32.mrb[6].mxu1 }
 0x5a9   : > { %v814_v63 = vadd.f32 %v2037_v62, %v666_v61  ;;  %v808_v0 = vpop.f32.mrb[7].mxu1 }
 0x5aa   : > { %v809_v1 = vadd.f32 %v808_v0, %v666_v61  ;;  %v1188_v61 = vld [vmem:[#allocation5 + $0xaf8] sm:$0xff]  ;;  %v1187_v0 = vld [vmem:[#allocation5 + $0xaf0] sm:$0xff] }
 0x5ab   : > { %v818_v3 = vmax.f32 %v814_v63, 0.0  ;;  %v2357_v62 = vpack.c.bf16 %v1188_v61, %v1184_v60  ;;  %v1183_v63 = vld [vmem:[#allocation5 + $0xad0] sm:$0xff]  ;;  %v1189_v61 = vld [vmem:[#allocation5 + $0xb00] sm:$0xff] }
 0x5ac   : > { %v817_v2 = vmax.f32 %v809_v1, 0.0  ;;  %v2359_v1 = vpack.c.bf16 %v1187_v0, %v1183_v63  ;;  %v1198_v63 = vld [vmem:[#allocation5 + $0xb48] sm:$0xff] }
 0x5ad   : > { %v1202_v0 = vld [vmem:[#allocation5 + $0xb68] sm:$0xff] }
 0x5ae   : > { %2070 = vmatprep.mubr.f32.mxu1 %v817_v2  ;;  %v1192_v2 = vld [vmem:[#allocation5 + $0xb18] sm:$0xff] }
 0x5af   : > { %2071 = vmatmul.mubr.f32.vlgmr.msra.gmra.mrb[8].mxu1 %v818_v3  ;;  %v1196_v3 = vld [vmem:[#allocation5 + $0xb38] sm:$0xff] }
 0x5b0   : > { %2077 = vmatprep.mubr.msk.f32.mxu1 %vm397_vm0, %v2910_v26  ;;  %v2361_v4 = vpack.c.bf16 %v1196_v3, %v1192_v2  ;;  %v2333_v2 = vpack.c.bf16 %v1202_v0, %v1198_v63  ;;  %v1197_v3 = vld [vmem:[#allocation5 + $0xb40] sm:$0xff] }
 0x682   : > { %v2072_v25 = vpop.f32.mrb[8].mxu1 }
 0x683   : > { %v902_v27 = vpop.f32.mrb[9].mxu1 }
 0x684   : > { %v2269_v28 = vpack.c.bf16 %v2072_v25, %v902_v27  ;;  %v2375_v25 = vpack.c.bf16 %v1219_v24, %v1215_v23  ;;  %v1004_v27 = vld [vmem:[#allocation7 + $0x4] ss:$0 sm:$0xff] }
 0x686   : > { %2270 = vmatprep.subr.bf16.mxu1 %v2269_v28 }
 0x687   : > { %2272 = vmatpush3.bf16.msra.mxu1 %v2269_v28 }
 0x68a   : > { %2078 = vmatmul.mubr.msk.f32.vlgmr.msra.gmra.mrb[10].mxu1 %vm397_vm0, %v2915_v35 }
 0x68b   : > { %2119 = vmatprep.mubr.msk.f32.mxu1 %vm397_vm0, %v2910_v26 }
 0x75d   : > { %v2079_v33 = vpop.f32.mrb[10].mxu1 }
 0x75e   : > { %v983_v34 = vadd.f32 %v2079_v33, %v835_v32  ;;  %v977_v36 = vpop.f32.mrb[11].mxu1  ;;  %v1158_v33 = vld [vmem:[#allocation5 + $0xa08] sm:$0xff] }
 0x75f   : > { %v978_v37 = vadd.f32 %v977_v36, %v835_v32 }
 0x760   : > { %v987_v39 = vmax.f32 %v983_v34, 0.0  ;;  %v1162_v34 = vld [vmem:[#allocation5 + $0xa28] sm:$0xff] }
 0x761   : > { %v986_v38 = vmax.f32 %v978_v37, 0.0 }
 0x763   : > { %2112 = vmatprep.mubr.f32.mxu0 %v986_v38  ;;  %v2313_v38 = vpack.c.bf16 %v1162_v34, %v1158_v33 }
 0x764   : > { %2113 = vmatmul.mubr.f32.vlgmr.msra.gmra.mrb[4].mxu0 %v987_v39  ;;  %v1157_v39 = vld [vmem:[#allocation5 + $0xa00] sm:$0xff] }
 0x765   : > { %2348 = vmatpush1.bf16.msra.mxu0 %v2347_v48  ;;  %v1178_v48 = vld [vmem:[#allocation5 + $0xaa8] sm:$0xff]  ;;  %1460 = vmatprep.mubr.f32.mxu0 %v2677_v18 }
 0x766   : > { %2350 = vmatprep.subr.bf16.mxu0 %v2349_v51  ;;  %v2321_v50 = vpack.c.bf16 %v1178_v48, %v1174_v47  ;;  %v1173_v51 = vld [vmem:[#allocation5 + $0xa80] sm:$0xff] }
 0x767   : > { %v2323_v55 = vpack.c.bf16 %v1177_v52, %v1173_v51 }
 0x769   : > { %2352 = vmatpush1.bf16.msra.mxu0 %v2351_v54  ;;  %v1186_v54 = vld [vmem:[#allocation5 + $0xae8] sm:$0xff] }
 0x76a   : > { %2354 = vmatprep.subr.bf16.mxu0 %v2353_v57  ;;  %v2325_v56 = vpack.c.bf16 %v1186_v54, %v1182_v53  ;;  %v1181_v57 = vld [vmem:[#allocation5 + $0xac0] sm:$0xff] }
 0x837   : > { %v2114_v40 = vpop.f32.mrb[4].mxu0 }
 0x838   : > { %v1071_v41 = vpop.f32.mrb[5].mxu0 }
 0x839   : > { %v2305_v42 = vpack.c.bf16 %v2114_v40, %v1071_v41  ;;  %v1161_v40 = vld [vmem:[#allocation5 + $0xa20] sm:$0xff]  ;;  %v1166_v41 = vld [vmem:[#allocation5 + $0xa48] sm:$0xff] }
 0x83a   : > { %v2315_v43 = vpack.c.bf16 %v1161_v40, %v1157_v39 }
 0x83b   : > { %2306 = vmatprep.subr.bf16.mxu1 %v2305_v42 }
 0x83c   : > { %2308 = vmatpush3.bf16.msra.mxu1 %v2305_v42  ;;  %v1170_v42 = vld [vmem:[#allocation5 + $0xa68] sm:$0xff] }
 0x83d   : > { %v2317_v44 = vpack.c.bf16 %v1170_v42, %v1166_v41 }
 0x83f   : > { %2120 = vmatmul.mubr.msk.f32.vlgmr.msra.gmra.mrb[12].mxu1 %vm397_vm0, %v2915_v35 }
 0x840   : > { %2126 = vmatprep.mubr.msk.f32.mxu1 %vm397_vm0, %v2910_v26  ;;  %v1175_v26 = vld [vmem:[#allocation5 + $0xa90] sm:$0xff] }
 0x841   : > { %v2355_v59 = vpack.c.bf16 %v1179_v58, %v1175_v26  ;;  %v1185_v26 = vld [vmem:[#allocation5 + $0xae0] sm:$0xff]  ;;  %v1190_v58 = vld [vmem:[#allocation5 + $0xb08] sm:$0xff] }
 0x842   : > { %v2327_v60 = vpack.c.bf16 %v1185_v26, %v1181_v57 }
 0x843   : > { %2356 = vmatpush1.bf16.msra.mxu0 %v2355_v59  ;;  %v1194_v59 = vld [vmem:[#allocation5 + $0xb28] sm:$0xff] }
 0x844   : > { %2358 = vmatprep.subr.bf16.mxu0 %v2357_v62  ;;  %v1193_v62 = vld [vmem:[#allocation5 + $0xb20] sm:$0xff] }
 0x847   : > { %2360 = vmatpush1.bf16.msra.mxu0 %v2359_v1  ;;  %v2331_v1 = vpack.c.bf16 %v1193_v62, %v1189_v61 }
 0x848   : > { %2362 = vmatprep.subr.bf16.mxu0 %v2361_v4  ;;  %v1201_v4 = vld [vmem:[#allocation5 + $0xb60] sm:$0xff] }
 0x84b   : > { %2364 = vmatpush1.bf16.msra.mxu0 %v2363_v7  ;;  %v2335_v7 = vpack.c.bf16 %v1201_v4, %v1197_v3 }
 0x84c   : > { %2366 = vmatprep.subr.bf16.mxu0 %v2365_v10  ;;  %v1209_v10 = vld [vmem:[#allocation5 + $0xba0] sm:$0xff] }
 0x84f   : > { %2368 = vmatpush1.bf16.msra.mxu0 %v2367_v13  ;;  %v2339_v13 = vpack.c.bf16 %v1209_v10, %v1205_v9 }
 0x850   : > { %2370 = vmatprep.subr.bf16.mxu0 %v2369_v16  ;;  %v1217_v16 = vld [vmem:[#allocation5 + $0xbe0] sm:$0xff] }
 0x851   : > { %v2343_v17 = vpack.c.bf16 %v1217_v16, %v1213_v15 }
 0x853   : > { %2372 = vmatpush1.bf16.msra.mxu0 %v2371_v19 }
 0x854   : > { %2374 = vmatprep.subr.bf16.mxu0 %v2373_v22  ;;  %v2940_v22 = vshrl.u32 %v1299_v21, 7 }
 0x856   : > { %v1301_v23 = vsub.s32 0, %v2940_v22  ;;  %v1309_v24 = vsub.s32 2, %v2940_v22 }
 0x857   : > { %2376 = vmatpush1.bf16.msra.mxu0 %v2375_v25  ;;  %v1222_v25 = vld [vmem:[#allocation7 + $0x5] ss:$8 sm:$0xf] }
 0x912   : > { %v2121_v28 = vpop.f32.mrb[12].mxu1 }
 0x913   : > { %v1152_v29 = vadd.f32 %v2121_v28, %v1004_v27  ;;  %v1146_v30 = vpop.f32.mrb[13].mxu1  ;;  %v1313_v28 = vsub.s32 3, %v2940_v22 }
 0x914   : > { %v1147_v31 = vadd.f32 %v1146_v30, %v1004_v27  ;;  %v1305_v27 = vsub.s32 1, %v2940_v22  ;;  %v1310_v30 = vrot.slane %v1222_v25, %v1309_v24 }
 0x915   : > { %v1156_v32 = vmax.f32 %v1152_v29, 0.0  ;;  %v1302_v29 = vrot.slane %v1222_v25, %v1301_v23 }
 0x916   : > { %v1155_v36 = vmax.f32 %v1147_v31, 0.0  ;;  %v1306_v31 = vrot.slane %v1222_v25, %v1305_v27 }
 0x918   : > { %v2309_v37 = vpack.c.bf16 %v1156_v32, %v1155_v36  ;;  %v1314_v32 = vrot.slane %v1222_v25, %v1313_v28 }
 0x91a   : > { %2310 = vmatprep.subr.bf16.mxu1 %v2309_v37 }
 0x91b   : > { %2312 = vmatpush3.bf16.msra.mxu1 %v2309_v37 }
 0x91c   : > { %2314 = vmatprep.subr.bf16.mxu1 %v2313_v38 }
 0x91e   : > { %2127 = vmatmul.mubr.msk.f32.vlgmr.msra.gmra.mrb[14].mxu1 %vm397_vm0, %v2915_v35  ;;  %v2329_v35 = vpack.c.bf16 %v1194_v59, %v1190_v58 }
 0x91f   : > { %2316 = vmatpush1.bf16.msra.mxu1 %v2315_v43  ;;  %1383 = vmatprep.mubr.f32.mxu1 %v2677_v18 }
 0x920   : > { %2318 = vmatprep.subr.bf16.mxu1 %v2317_v44 }
 0x923   : > { %2320 = vmatpush1.bf16.msra.mxu1 %v2319_v49 }
 0x924   : > { %2322 = vmatprep.subr.bf16.mxu1 %v2321_v50 }
 0x927   : > { %2324 = vmatpush1.bf16.msra.mxu1 %v2323_v55 }
 0x928   : > { %2326 = vmatprep.subr.bf16.mxu1 %v2325_v56 }
 0x92b   : > { %2328 = vmatpush1.bf16.msra.mxu1 %v2327_v60 }
 0x92c   : > { %2330 = vmatprep.subr.bf16.mxu1 %v2329_v35 }
 0x92f   : > { %2332 = vmatpush1.bf16.msra.mxu1 %v2331_v1 }
 0x930   : > { %2334 = vmatprep.subr.bf16.mxu1 %v2333_v2 }
 0x933   : > { %2336 = vmatpush1.bf16.msra.mxu1 %v2335_v7 }
 0x934   : > { %2338 = vmatprep.subr.bf16.mxu1 %v2337_v8 }
 0x937   : > { %2340 = vmatpush1.bf16.msra.mxu1 %v2339_v13 }
 0x938   : > { %2342 = vmatprep.subr.bf16.mxu1 %v2341_v14 }
 0x93b   : > { %2344 = vmatpush1.bf16.msra.mxu1 %v2343_v17 }
 0x9f1   : > { %v2128_v19 = vpop.f32.mrb[14].mxu1 }
 0x9f2   : > { %v1289_v20 = vpop.f32.mrb[15].mxu1 }
 0x9f3   : > { %1384 = vmatmul.mubr.f32.vlgmr.msra.gmra.mrb[16].mxu1 %v1289_v20  ;;  %1461 = vmatmul.mubr.f32.vlgmr.msra.gmra.mrb[6].mxu0 %v1289_v20 }
 0x9f4   : > { %1389 = vmatprep.mubr.f32.mxu1 %v2677_v18  ;;  %1466 = vmatprep.mubr.f32.mxu0 %v2677_v18 }
 0x9f7   : > { %1390 = vmatmul.mubr.f32.gmra.mrb[18].mxu1 %v2128_v19  ;;  %1467 = vmatmul.mubr.f32.gmra.mrb[8].mxu0 %v2128_v19 }
 0xac6   : > { %v1385_v33 = vpop.f32.mrb[16].mxu1  ;;  %v1462_v34 = vpop.f32.mrb[6].mxu0 }
 0xac7   : > { %v1386_v36 = vadd.f32 %v1385_v33, %v1302_v29  ;;  %v1463_v37 = vadd.f32 %v1462_v34, %v1310_v30  ;;  %v1387_v38 = vpop.f32.mrb[17].mxu1  ;;  %v1464_v39 = vpop.f32.mrb[7].mxu0 }
 0xac8   : > { %v1388_v40 = vadd.f32 %v1387_v38, %v1306_v31  ;;  %v1465_v41 = vadd.f32 %v1464_v39, %v1314_v32 }
 0xac9   : > { %v1473_v42 = vmax.f32 %v1386_v36, 0.0  ;;  %v1475_v43 = vmax.f32 %v1463_v37, 0.0 }
 0xaca   : > { %v1474_v44 = vmax.f32 %v1388_v40, 0.0  ;;  %v1476_v45 = vmax.f32 %v1465_v41, 0.0  ;;  %v1391_v46 = vpop.f32.mrb[18].mxu1  ;;  %v1468_v47 = vpop.f32.mrb[8].mxu0 }
 0xacb   : > { %2462 = vtanh.f32 %v1473_v42  ;;  %v1392_v48 = vadd.f32 %v1391_v46, %v1302_v29  ;;  %v1469_v49 = vadd.f32 %v1468_v47, %v1310_v30  ;;  %v1393_v50 = vpop.f32.mrb[19].mxu1  ;;  %v1470_v51 = vpop.f32.mrb[9].mxu0 }
 0xacc   : > { %2464 = vtanh.f32 %v1475_v43  ;;  %v1394_v52 = vadd.f32 %v1393_v50, %v1306_v31  ;;  %v1471_v53 = vadd.f32 %v1470_v51, %v1314_v32 }
 0xacd   : > { %2466 = vtanh.f32 %v1474_v44  ;;  %v1477_v54 = vmax.f32 %v1392_v48, 0.0  ;;  %v1479_v55 = vmax.f32 %v1469_v49, 0.0 }
 0xace   : > { %2468 = vtanh.f32 %v1476_v45  ;;  %v1478_v56 = vmax.f32 %v1394_v52, 0.0  ;;  %v1480_v57 = vmax.f32 %v1471_v53, 0.0 }
 0xacf   : > { %2470 = vtanh.f32 %v1477_v54 }
 0xad0   : > { %2472 = vtanh.f32 %v1479_v55 }
 0xad1   : > { %2474 = vtanh.f32 %v1478_v56 }
 0xad2   : > { %2476 = vtanh.f32 %v1480_v57 }
 0xad5   : > { %v2463_v26 = vpop.eup %2462 }
 0xad6   : > { %v2465_v58 = vpop.eup %2464  ;;  %1489 = vst [vmem:[%s2947_s23] sm:$0xff] %v2463_v26 }
 0xad7   : > { %v2467_v59 = vpop.eup %2466  ;;  %1491 = vst [vmem:[%s2947_s23 + $0x10] sm:$0xff] %v2465_v58 }
 0xad8   : > { %v2469_v60 = vpop.eup %2468  ;;  %1490 = vst [vmem:[%s2947_s23 + $0x8] sm:$0xff] %v2467_v59 }
 0xad9   : > { %v2471_v35 = vpop.eup %2470  ;;  %1492 = vst [vmem:[%s2947_s23 + $0x18] sm:$0xff] %v2469_v60 }
 0xada   : > { %v2473_v61 = vpop.eup %2472  ;;  %1493 = vst [vmem:[%s2947_s23 + $0x20] sm:$0xff] %v2471_v35  ;;  %v1497_v62 = vmax.f32 %v2463_v26, %v2471_v35 }
 0xadb   : > { %v2475_v63 = vpop.eup %2474  ;;  %1495 = vst [vmem:[%s2947_s23 + $0x30] sm:$0xff] %v2473_v61  ;;  %v1511_v0 = vmax.f32 %v2465_v58, %v2473_v61 }
 0xadc   : > { %v2477_v1 = vpop.eup %2476  ;;  %v1498_v2 = vrot.slane %v1497_v62, 4  ;;  %1494 = vst [vmem:[%s2947_s23 + $0x28] sm:$0xff] %v2475_v63  ;;  %v1504_v3 = vmax.f32 %v2467_v59, %v2475_v63 }
 0xadd   : > { %1496 = vst [vmem:[%s2947_s23 + $0x38] sm:$0xff] %v2477_v1  ;;  %v1512_v4 = vrot.slane %v1511_v0, 4  ;;  %v1518_v5 = vmax.f32 %v2469_v60, %v2477_v1 }
 0xade   : > { %v1505_v6 = vrot.slane %v1504_v3, 4  ;;  %v1499_v7 = vmax.f32 %v1497_v62, %v1498_v2 }
 0xadf   : > { %v1513_v8 = vmax.f32 %v1511_v0, %v1512_v4  ;;  %v1519_v9 = vrot.slane %v1518_v5, 4 }
 0xae0   : > { %v1500_v10 = vrot.slane %v1499_v7, 2  ;;  %v1506_v11 = vmax.f32 %v1504_v3, %v1505_v6 }
 0xae1   : > { %v1514_v12 = vrot.slane %v1513_v8, 2  ;;  %v1520_v13 = vmax.f32 %v1518_v5, %v1519_v9 }
 0xae2   : > { %v1501_v14 = vmax.f32 %v1499_v7, %v1500_v10  ;;  %v1507_v15 = vrot.slane %v1506_v11, 2 }
 0xae3   : > { %v1515_v16 = vmax.f32 %v1513_v8, %v1514_v12  ;;  %v1521_v17 = vrot.slane %v1520_v13, 2 }
 0xae4   : > { %v1502_v18 = vrot.slane %v1501_v14, 1  ;;  %v1508_v19 = vmax.f32 %v1506_v11, %v1507_v15 }
 0xae5   : > { %v1516_v20 = vrot.slane %v1515_v16, 1  ;;  %v1522_v23 = vmax.f32 %v1520_v13, %v1521_v17 }
 0xae6   : > { %v2957_v24 = vmax.f32 %v1501_v14, %v1502_v18  ;;  %v1509_v25 = vrot.slane %v1508_v19, 1 }
 0xae7   : > { %v2959_v27 = vmax.f32 %v1515_v16, %v1516_v20  ;;  %v1523_v28 = vrot.slane %v1522_v23, 1 }
 0xae8   : > { %v2961_v29 = vmax.f32 %v1508_v19, %v1509_v25  ;;  %v1525_v30 = vmul.f32 %v2957_v24, %v2957_v24 }
 0xae9   : > { %v2965_v31 = vmax.f32 %v1522_v23, %v1523_v28  ;;  %v1527_v33 = vmul.f32 %v2959_v27, %v2959_v27 }
 0xaea   : > { %v1526_v32 = vmul.f32 %v2961_v29, %v2961_v29  ;;  %v1530_v34 = vsel %vm1529_vm1, %v1525_v30, 0.0 }
 0xaeb   : > { %v1528_v36 = vmul.f32 %v2965_v31, %v2965_v31  ;;  %v1533_v39 = vsel %vm1529_vm1, %v1527_v33, 0.0 }
 0xaec   : > { %v1531_v37 = vsel %vm1529_vm1, %v1526_v32, 0.0 }
 0xaed   : > { %v1532_v38 = vadd.f32 %v1531_v37, %v1530_v34  ;;  %v1535_v41 = vsel %vm1529_vm1, %v1528_v36, 0.0 }
 0xaef   : > { %v1534_v40 = vadd.f32 %v1533_v39, %v1532_v38 }
 0xaf1   : > { %v1536_v42 = vadd.f32 %v1535_v41, %v1534_v40 }
 0xaf3   : > { %1537 = vadd.xlane.f32.xlu0 %v1536_v42 }
 0xb80   : > { %v1538_v43 = vpop.xlane.xlu0 %1537 }
 0xb81   : > { %v1539_v44 = vrot.slane %v1538_v43, 4 }
 0xb83   : > { %v1540_v45 = vadd.f32 %v1539_v44, %v1538_v43 }
 0xb85   : > { %v1541_v46 = vrot.slane %v1540_v45, 2 }
 0xb87   : > { %v1542_v47 = vadd.f32 %v1541_v46, %v1540_v45 }
 0xb89   : > { %v1543_v48 = vrot.slane %v1542_v47, 1 }
 0xb8b   : > { %v1544_v49 = vadd.f32 %v1543_v48, %v1542_v47 }
 0xb8d   : > { %2377 = vpush %v1544_v49 }
 0xb8e   : > { %2579 = shalt.err (!%p2576_p13)
}
 0xb8f   : > { %s2580_s24 = scalar_lea.hbm %s2978_s13, 1024  ;;  %s2584_s28 = scalar_lea.hbm %s3066_s5, 2048 }
 0xb90   : > { %p2581_p6 = scmp.ne.s32.totalorder %s2978_s13, %s2580_s24  ;;  %p2585_p5 = scmp.lt.u32.totalorder %s2978_s13, %s3066_s5 }
 0xb91   : > { %p2586_p8 = scmp.lt.u32.totalorder %s2584_s28, %s2580_s24  ;;  %p2588_p0 = scmp.lt.u32.totalorder %s2580_s24, %s2978_s13 }
 0xb92   : > { %p2582_p10 = pnand %p2581_p6, %p3080_p1 }
 0xb93   : > { %p2587_p11 = por %p2586_p8, %p2585_p5 }
 0xb94   : > { %p2583_p4 = pneg %p2582_p10 }
 0xb95   : > { %p2589_p3 = por %p2588_p0, %p2587_p11 }
 0xb97   : > { %p2590_p7 = pnand %p2589_p3, %p2583_p4 }
 0xb99   : > { %2593 = shalt.err (!%p2590_p7)
}
 0xb9a   : > { %s2679_s9 = smov 512   ;;  %s2680_s12 = smov 32   ;;  %v2682_v52 = vmov 1966171168   ;;  %vm1586_vm2 = vcmp.lt.s32.totalorder %v1299_v21, 512 }
 0xb9b   : > { %2392 = dma.vmem_to_hbm [thread:$0]  (%p3080_p1), %s2980_s7, 1024, %s2978_s13, %s1595_s15, %s2679_s9, %s2679_s9, %s2680_s12   ;;  %v1562_v53 = vunpack.c.l.s4 %v2682_v52 }
 0xb9c   : > { %s2681_s6 = smov 1e-12   ;;  %s1770_s24 = sshll.u32 %s2886_s29, 2 }
 0xb9d   : > { %v1563_v54 = vunpack.c.0.s8 %v1562_v53  ;;  %s1796_s7 = sshll.u32 %s2735_s22, 6  ;;  %s288_s13 = scalar_lea.vmem [#allocation8], %s1770_s24 }
 0xb9e   : > { %s1609_s15 = sshll.u32 %s288_s13, 4  ;;  %s3017_s28 = scalar_lea.hbm %s3065_s4, %s1796_s7  ;;  %s3019_s15 = int_to_ptr.vmem [resolvable:$true] %s1609_s15 }
 0xb9f   : > { %v1566_v56 = vsub.s32 %v1563_v54, %v2940_v22  ;;  %s1590_s23 = scalar_lea.sflag [#allocation4], %s2886_s29  ;;  %s2594_s30 = scalar_lea.vmem %s3019_s15, 64 }
 0xba0   : > { %p2595_p9 = scmp.ne.s32.totalorder %s3019_s15, %s2594_s30  ;;  %s2683_s22 = smov [#allocation8]  }
 0xba1   : > { %s2598_s9 = sshll.u32 %s2683_s22, 4  ;;  %s2599_s9 = int_to_ptr.vmem [resolvable:$false] %s2598_s9 }
 0xba2   : > { %p2596_p12 = pnand %p2595_p9, %p3080_p1  ;;  %s2600_s12 = scalar_lea.vmem %s2599_s9, 128 }
 0xba3   : > { %p2601_p13 = scmp.lt.s32.totalorder %s3019_s15, %s2599_s9  ;;  %p2602_p6 = scmp.lt.s32.totalorder %s2600_s12, %s2594_s30 }
 0xba4   : > { %p2597_p2 = pneg %p2596_p12 }
 0xba5   : > { %p2603_p10 = por %p2602_p6, %p2601_p13 }
 0xba7   : > { %p2604_p4 = pnand %p2603_p10, %p2597_p2 }
 0xbbe   : > { %s2378_s27 = spop %2377 }
 0xbbf   : > { %s1546_s26 = smax.f32 %s2681_s6, %s2378_s27 }
 0xbc0   : > { %v1547_v50 = vstv %s1546_s26 }
 0xbc1   : > { %2478 = vrsqrt.f32 %v1547_v50 }
 0xbcb   : > { %v2479_v51 = vpop.eup %2478 }
 0xbcc   : > { %2379 = vpush %v2479_v51 }
 0xbfd   : > { %s2380_s8 = spop %2379 }
 0xbfe   : > { %v1550_v55 = vstv %s2380_s8 }
 0xbff   : > { %v1551_v57 = vmul.f32 %v1550_v55, %v2957_v24  ;;  %v1552_v26 = vmul.f32 %v1550_v55, %v2961_v29  ;;  %v1553_v58 = vmul.f32 %v1550_v55, %v2959_v27  ;;  %v1554_v59 = vmul.f32 %v1550_v55, %v2965_v31 }
 0xc01   : > { %v1559_v60 = vcombine.low %v1551_v57, %v1552_v26  ;;  %v1560_v35 = vcombine.low %v1553_v58, %v1554_v59 }
 0xc03   : > { %v1567_v61 = vrot.slane %v1559_v60, %v1566_v56  ;;  %v1574_v62 = vrot.slane %v1560_v35, %v1566_v56 }
 0xc05   : > { %v1575_v63 = vcombine.low %v1567_v61, %v1574_v62 }
 0xc07   : > { %v1582_v22 = vrot.slane %v1575_v63, %v1566_v56 }
 0xc09   : > { %1588 = vst.msk [vmem:[%s288_s13] sm:$0xf] %vm1586_vm2, %v1582_v22 }
 0xc0a   : > { %2607 = shalt.err (!%p2604_p4)
}
 0xc0b   : > { %s2608_s29 = scalar_lea.hbm %s3017_s28, 64  ;;  %s2612_s26 = scalar_lea.hbm %s3065_s4, 128 }
 0xc0c   : > { %p2609_p5 = scmp.ne.s32.totalorder %s3017_s28, %s2608_s29  ;;  %p2613_p0 = scmp.lt.u32.totalorder %s3017_s28, %s3065_s4 }
 0xc0d   : > { %p2614_p3 = scmp.lt.u32.totalorder %s2612_s26, %s2608_s29  ;;  %p2616_p9 = scmp.lt.u32.totalorder %s2608_s29, %s3017_s28 }
 0xc0e   : > { %p2610_p8 = pnand %p2609_p5, %p3080_p1 }
 0xc0f   : > { %p2615_p7 = por %p2614_p3, %p2613_p0 }
 0xc10   : > { %p2611_p11 = pneg %p2610_p8 }
 0xc11   : > { %p2617_p12 = por %p2616_p9, %p2615_p7 }
 0xc13   : > { %p2618_p2 = pnand %p2617_p12, %p2611_p11 }
 0xc15   : > { %2621 = shalt.err (!%p2618_p2)
}
 0xc16   : > { %2391 = dma.vmem_to_hbm [thread:$0]  (%p3080_p1), %s3019_s15, 64, %s3017_s28, %s1590_s23  }
 0xc17 PF: > { %s1637_s7 = sand.u32 1, %s2656_s18   ;;  %p3081_p13 = scmp.ne.s32.totalorder %s3071_s25, 0 }
 0xc18   : > { %p3082_p6 = scmp.ge.s32.totalorder %s2668_s21, 2  ;;  %s1638_s13 = scalar_lea.sflag [#allocation4], %s1637_s7 }
 0xc1a   : > { %p2407_p10 = pnand %p3082_p6, %p3081_p13 }
 0xc1c   : > { %2647 = dma.done.wait (!%p2407_p10), %s1638_s13, 64  }
 0xc1d   : > { %2649 = vsyncadd (!%p2407_p10), %s1638_s13, 4294967232  ;;  %s1647_s10 = scalar_lea.sflag [#allocation10], %s1637_s7 }
 0xc1e   : > { %2651 = dma.done.wait (!%p2407_p10), %s1647_s10, 1024  }
 0xc1f   : > { %2653 = vsyncadd (!%p2407_p10), %s1647_s10, 4294966272  ;;  %p23_p1 = scmp.ge.s32.totalorder %s2824_s14, 4   ;;  %s3083_s18 = smov %s2660_s19 }
 0xc20   : > { %s3084_s19 = smov %s2664_s20  ;;  %s3085_s20 = smov %s2840_s17 }
 0xc21   : > { %s3086_s21 = smov %s2824_s14  ;;  %25 = sbr.rel (!%p23_p1) target bundleno = 8 (0x8), region = 110 }
 0xc28   :  { %1652 = vsyncpa [#allocation3], 1 }
 0xc29   :  { %1654 = vsyncpa [#allocation3 + $0x1], 1 }
 0xc2a   :  { %1655 = vsyncpa [#allocation6], 1 }
 0xc2b   :  { %1656 = vsyncpa [#allocation4], 1 }
 0xc2c   :  { %1658 = vsyncpa [#allocation4 + $0x1], 1 }
 0xc2d   :  { %1659 = vsyncpa [#allocation10], 1 }
 0xc2e   :  { %1661 = vsyncpa [#allocation10 + $0x1], 1 }

</bundles_post_ra>
